<compile_context>
chip_gen: v5e
topology: v5e:2x2
jax: 0.10.0
libtpu: 0.0.40
codegen_flags: <defaults>
</compile_context>

<pallas_src>
import functools

import jax
import jax.numpy as jnp
from jax.experimental import pallas as pl
from jax.experimental.pallas import tpu as pltpu

LN_EPS = 1e-5  # PyTorch nn.LayerNorm default


def _round_up(a, b):
    return (a + b - 1) // b * b


def _layer_norm_noaffine(x):
    # Two-pass variance E[(x - mu)^2] (matches nn.LayerNorm; no cancellation issue).
    mu = jnp.mean(x, axis=-1, keepdims=True)
    xc = x - mu
    var = jnp.mean(xc * xc, axis=-1, keepdims=True)
    return xc * jax.lax.rsqrt(var + LN_EPS)


def ff_kernel(x_ref, w1_ref, w2_ref, wo_ref, bias_ref, out_ref, *, dh, dout):
    """Fused forward for one (TM, Din) batch tile:
       LN -> Linear -> ReLU -> LN -> Linear -> ReLU -> Linear.
    Activations stream in/out as bf16; weights are bf16 (MXU native); accumulation f32."""
    x = x_ref[...].astype(jnp.float32)          # (TM, Din) -> f32 for LN statistics
    b1 = bias_ref[0:1, :dh]                     # slice the ref; rows 0/1/2 = b1/b2/bo
    b2 = bias_ref[1:2, :dh]
    bo = bias_ref[2:3, :dout]

    # ---- hidden layer 1 : LN -> Linear -> ReLU (dropout p=0 == identity) ----
    h = _layer_norm_noaffine(x)
    h = jnp.dot(h.astype(jnp.bfloat16), w1_ref[...],
                preferred_element_type=jnp.float32) + b1
    h = jnp.maximum(h, 0.0)

    # ---- hidden layer 2 : LN -> Linear -> ReLU ----
    h = _layer_norm_noaffine(h)
    h = jnp.dot(h.astype(jnp.bfloat16), w2_ref[...],
                preferred_element_type=jnp.float32) + b2
    h = jnp.maximum(h, 0.0)

    # ---- output Linear (no LN / activation, matches self.out) ----
    o = jnp.dot(h.astype(jnp.bfloat16), wo_ref[...],
                preferred_element_type=jnp.float32) + bo
    out_ref[...] = o.astype(out_ref.dtype)


@functools.partial(jax.jit, static_argnames=("max_tm",))
def ff_forward(x, params, *, max_tm=512):
    """x: (B, dim_input) bf16 (or f32); params: folded/packed params (see fold_params).
    Returns (B, dim_output) bf16."""
    B, din = x.shape
    dh = params["w1"].shape[1]
    dout = params["wo"].shape[1]
    assert din % 128 == 0 and dh % 128 == 0 and dout % 128 == 0, (
        "feature dims must be 128-multiples (lane-dense)")

    # ---- batch tile: large, 8-aligned; prefer >=2 grid steps (v7x: 2 TensorCores) ----
    tm = max(8, min(max_tm, _round_up(pl.cdiv(B, 2), 8)))
    b_pad = _round_up(B, tm)
    xp = x if b_pad == B else jnp.pad(x, ((0, b_pad - B), (0, 0)))
    grid = (b_pad // tm,)

    bpe_x = xp.dtype.itemsize
    bpe_w = params["w1"].dtype.itemsize
    wt_bytes = (params["w1"].size + params["w2"].size + params["wo"].size) * bpe_w
    bias_bytes = params["bias_pack"].size * 4

    # ---- explicit VMEM budget: streamed tiles (double-buffered) + resident weights ----
    act_bytes = 2 * tm * din * bpe_x + 2 * tm * dout * 2
    inter_bytes = 6 * tm * max(din, dh, dout) * 4          # f32 intermediates headroom
    vmem_limit = int(1.5 * (2 * wt_bytes + act_bytes + inter_bytes + 2 * bias_bytes))
    vmem_limit = max(32 << 20, min(vmem_limit + (4 << 20), 64 << 20))

    flops = 2 * b_pad * (din * dh + dh * dh + dh * dout) + 12 * b_pad * (din + dh)
    bytes_accessed = (b_pad * din * bpe_x + wt_bytes + bias_bytes + b_pad * dout * 2)
    cost = pl.CostEstimate(flops=flops, transcendentals=2 * b_pad,
                           bytes_accessed=bytes_accessed)

    kernel = functools.partial(ff_kernel, dh=dh, dout=dout)

    out = pl.pallas_call(
        kernel,
        out_shape=jax.ShapeDtypeStruct((b_pad, dout), jnp.bfloat16),
        grid=grid,
        in_specs=[
            # activations: streamed, double-buffered
            pl.BlockSpec((tm, din), lambda i: (i, 0)),
            # weights / biases: constant index map, single-buffered VMEM residents
            pl.BlockSpec(params["w1"].shape, lambda i: (0, 0),
                         pipeline_mode=pl.Buffered(1)),
            pl.BlockSpec(params["w2"].shape, lambda i: (0, 0),
                         pipeline_mode=pl.Buffered(1)),
            pl.BlockSpec(params["wo"].shape, lambda i: (0, 0),
                         pipeline_mode=pl.Buffered(1)),
            pl.BlockSpec(params["bias_pack"].shape, lambda i: (0, 0),
                         pipeline_mode=pl.Buffered(1)),
        ],
        out_specs=pl.BlockSpec((tm, dout), lambda i: (i, 0)),
        compiler_params=pltpu.CompilerParams(
            dimension_semantics=("parallel",),     # shard batch grid over TCs (v7x)
            vmem_limit_bytes=vmem_limit),
        cost_estimate=cost,
    )(xp, params["w1"], params["w2"], params["wo"], params["bias_pack"])

    return out[:B] if b_pad != B else out


# ----------------------------------------------------------------------------- params


def init_raw_params(key, din, dh, dout):
    """PyTorch-style parameters (Linear weights stored as (in, out) = W.T)."""
    ks = jax.random.split(key, 10)
    s_in = 1.0 / (din ** 0.5)
    s_h = 1.0 / (dh ** 0.5)
    return {
        # layer 0: LayerNorm(din), Linear(din -> dh)
        "g1": 1.0 + 0.1 * jax.random.normal(ks[0], (din,), jnp.float32),
        "be1": 0.1 * jax.random.normal(ks[1], (din,), jnp.float32),
        "w1": jax.random.uniform(ks[2], (din, dh), jnp.float32, -s_in, s_in),
        "b1": jax.random.uniform(ks[3], (dh,), jnp.float32, -s_in, s_in),
        # layer 1: LayerNorm(dh), Linear(dh -> dh)
        "g2": 1.0 + 0.1 * jax.random.normal(ks[4], (dh,), jnp.float32),
        "be2": 0.1 * jax.random.normal(ks[5], (dh,), jnp.float32),
        "w2": jax.random.uniform(ks[6], (dh, dh), jnp.float32, -s_h, s_h),
        "b2": jax.random.uniform(ks[7], (dh,), jnp.float32, -s_h, s_h),
        # out: Linear(dh -> dout)
        "wo": jax.random.uniform(ks[8], (dh, dout), jnp.float32, -s_h, s_h),
        "bo": jax.random.uniform(ks[9], (dout,), jnp.float32, -s_h, s_h),
    }


def _fold_ln_into_linear(g, be, w, b):
    # (xn * g + be) @ W + b  ==  xn @ (g[:, None] * W) + (be @ W + b)
    return g[:, None] * w, b + be @ w


def fold_params(raw, weight_dtype=jnp.bfloat16):
    """Fold LN affine into the following Linear; pack biases; cast weights to bf16."""
    w1, b1 = _fold_ln_into_linear(raw["g1"], raw["be1"], raw["w1"], raw["b1"])
    w2, b2 = _fold_ln_into_linear(raw["g2"], raw["be2"], raw["w2"], raw["b2"])
    wo, bo = raw["wo"], raw["bo"]
    dh, dout = w1.shape[1], wo.shape[1]
    assert dh % 128 == 0 and dout % 128 == 0, "bias packing assumes 128-multiple dims"
    dmax = max(dh, dout)
    bias_pack = jnp.zeros((8, dmax), jnp.float32)
    bias_pack = bias_pack.at[0, :dh].set(b1)
    bias_pack = bias_pack.at[1, :dh].set(b2)
    bias_pack = bias_pack.at[2, :dout].set(bo)
    return {
        "w1": w1.astype(weight_dtype),
        "w2": w2.astype(weight_dtype),
        "wo": wo.astype(weight_dtype),
        "bias_pack": bias_pack,
    }


# -------------------------------------------------------------------------- references


def ff_reference_f32(x, raw):
    """Pure-JAX f32 reference with the exact PyTorch forward semantics."""
    def ln(h, g, b):
        mu = jnp.mean(h, axis=-1, keepdims=True)
        var = jnp.mean((h - mu) ** 2, axis=-1, keepdims=True)
        return (h - mu) / jnp.sqrt(var + LN_EPS) * g + b

    h = jnp.maximum(ln(x, raw["g1"], raw["be1"]) @ raw["w1"] + raw["b1"], 0.0)
    h = jnp.maximum(ln(h, raw["g2"], raw["be2"]) @ raw["w2"] + raw["b2"], 0.0)
    return h @ raw["wo"] + raw["bo"]


def ff_reference_folded(x, p):
    """Pure-JAX reference using the exact kernel math (bf16 streams/weights, f32 acc)."""
    dh = p["w1"].shape[1]
    dout = p["wo"].shape[1]
    b1 = p["bias_pack"][0:1, :dh]
    b2 = p["bias_pack"][1:2, :dh]
    bo = p["bias_pack"][2:3, :dout]

    def ln(h):
        mu = jnp.mean(h, axis=-1, keepdims=True)
        hc = h - mu
        return hc * jax.lax.rsqrt(jnp.mean(hc * hc, axis=-1, keepdims=True) + LN_EPS)

    def lin(h, w, b):
        return jnp.dot(h.astype(jnp.bfloat16), w,
                       preferred_element_type=jnp.float32) + b

    h = x.astype(jnp.float32)
    h = jnp.maximum(lin(ln(h), p["w1"], b1), 0.0)
    h = jnp.maximum(lin(ln(h), p["w2"], b2), 0.0)
    return lin(h, p["wo"], bo).astype(jnp.bfloat16)


# -------------------------------------------------------------------------------- main


if __name__ == "__main__":
    key = jax.random.PRNGKey(0)
    k_x, k_p = jax.random.split(key)

    # Lane-dense feature dims (128-multiples).
    dim_input = dim_hidden = dim_output = 128
    raw = init_raw_params(k_p, dim_input, dim_hidden, dim_output)
    params = fold_params(raw)

    # batch=256 (even 128-row tiles) and batch=200 (exercises the padded fallback path).
    for batch in (256, 200):
        x32 = jax.random.normal(jax.random.fold_in(k_x, batch),
                                (batch, dim_input), jnp.float32)
        x = x32.astype(jnp.bfloat16)          # activations streamed as bf16

        out = jax.block_until_ready(ff_forward(x, params))
        assert out.shape == (batch, dim_output)
        assert out.dtype == jnp.bfloat16

        # Tight check against a pure-JAX version of the exact kernel math.
        ref_fold = ff_reference_folded(x, params)
        assert jnp.allclose(out.astype(jnp.float32), ref_fold.astype(jnp.float32),
                            atol=2e-2, rtol=2e-2), "mismatch vs folded reference"

        # Looser check against the full-precision PyTorch-semantics reference
        # (difference = bf16 activation/weight quantization + LN-affine folding order).
        ref_f32 = ff_reference_f32(x.astype(jnp.float32), raw)
        assert jnp.allclose(out.astype(jnp.float32), ref_f32,
                            atol=8e-2, rtol=8e-2), "mismatch vs f32 reference"

    # TODO(synk): dropout_rate>0 (train-mode RNG masking) is not implemented; p=0/eval
    # makes Dropout the identity, matching the reference module here.
    print("KERNEL_OK")
</pallas_src>

<mosaic_0001>
module attributes {stable_mosaic.version = 11 : i64} {
  func.func @ff_kernel(%arg0: i32, %arg1: memref<128x128xbf16, #tpu.memory_space<vmem>>, %arg2: memref<128x128xbf16, #tpu.memory_space<vmem>>, %arg3: memref<128x128xbf16, #tpu.memory_space<vmem>>, %arg4: memref<128x128xbf16, #tpu.memory_space<vmem>>, %arg5: memref<8x128xf32, #tpu.memory_space<vmem>>, %arg6: memref<128x128xbf16, #tpu.memory_space<vmem>>) attributes {dimension_semantics = [#tpu.dimension_semantics<parallel>], iteration_bounds = array<i64: 2>, scalar_prefetch = 0 : i64, scratch_operands = 0 : i64, tpu.core_type = #tpu.core_type<tc>, window_params = [{transform_indices = @transform_0, window_bounds = array<i64: 128, 128>}, {pipeline_mode = #tpu.pipeline_mode<synchronous>, transform_indices = @transform_1, window_bounds = array<i64: 128, 128>}, {pipeline_mode = #tpu.pipeline_mode<synchronous>, transform_indices = @transform_2, window_bounds = array<i64: 128, 128>}, {pipeline_mode = #tpu.pipeline_mode<synchronous>, transform_indices = @transform_3, window_bounds = array<i64: 128, 128>}, {pipeline_mode = #tpu.pipeline_mode<synchronous>, transform_indices = @transform_4, window_bounds = array<i64: 8, 128>}, {transform_indices = @transform_5, window_bounds = array<i64: 128, 128>}]} {
    %c0 = arith.constant 0 : index
    %c0_0 = arith.constant 0 : index
    %0 = vector.load %arg1[%c0, %c0_0] : memref<128x128xbf16, #tpu.memory_space<vmem>>, vector<128x128xbf16>
    %1 = arith.extf %0 : vector<128x128xbf16> to vector<128x128xf32>
    %c0_1 = arith.constant 0 : index
    %c0_2 = arith.constant 0 : index
    %2 = vector.load %arg5[%c0_1, %c0_2] : memref<8x128xf32, #tpu.memory_space<vmem>>, vector<1x128xf32>
    %c1 = arith.constant 1 : index
    %c0_3 = arith.constant 0 : index
    %3 = vector.load %arg5[%c1, %c0_3] : memref<8x128xf32, #tpu.memory_space<vmem>>, vector<1x128xf32>
    %c2 = arith.constant 2 : index
    %c0_4 = arith.constant 0 : index
    %4 = vector.load %arg5[%c2, %c0_4] : memref<8x128xf32, #tpu.memory_space<vmem>>, vector<1x128xf32>
    %cst = arith.constant dense<0.000000e+00> : vector<128xf32>
    %5 = vector.multi_reduction <add>, %1, %cst [1] : vector<128x128xf32> to vector<128xf32>
    %6 = vector.shape_cast %5 : vector<128xf32> to vector<128x1xf32>
    %cst_5 = arith.constant 1.280000e+02 : f32
    %7 = vector.broadcast %cst_5 : f32 to vector<128x1xf32>
    %8 = arith.divf %6, %7 : vector<128x1xf32>
    %9 = vector.broadcast %8 : vector<128x1xf32> to vector<128x128xf32>
    %10 = arith.subf %1, %9 : vector<128x128xf32>
    %11 = arith.mulf %10, %10 : vector<128x128xf32>
    %cst_6 = arith.constant dense<0.000000e+00> : vector<128xf32>
    %12 = vector.multi_reduction <add>, %11, %cst_6 [1] : vector<128x128xf32> to vector<128xf32>
    %13 = vector.shape_cast %12 : vector<128xf32> to vector<128x1xf32>
    %cst_7 = arith.constant 1.280000e+02 : f32
    %14 = vector.broadcast %cst_7 : f32 to vector<128x1xf32>
    %15 = arith.divf %13, %14 : vector<128x1xf32>
    %cst_8 = arith.constant 9.99999974E-6 : f32
    %16 = vector.broadcast %cst_8 : f32 to vector<128x1xf32>
    %17 = arith.addf %15, %16 : vector<128x1xf32>
    %18 = math.rsqrt %17 : vector<128x1xf32>
    %19 = vector.broadcast %18 : vector<128x1xf32> to vector<128x128xf32>
    %20 = arith.mulf %10, %19 : vector<128x128xf32>
    %21 = arith.truncf %20 : vector<128x128xf32> to vector<128x128xbf16>
    %c0_9 = arith.constant 0 : index
    %c0_10 = arith.constant 0 : index
    %22 = vector.load %arg2[%c0_9, %c0_10] : memref<128x128xbf16, #tpu.memory_space<vmem>>, vector<128x128xbf16>
    %cst_11 = arith.constant dense<0.000000e+00> : vector<128x128xf32>
    %23 = tpu.matmul %21, %22, %cst_11 {dimension_numbers = #tpu.dot_dimension_numbers<[1], [0], [0], [1], [0, 0, 1, 1], [], []>} : vector<128x128xbf16>, vector<128x128xbf16>, vector<128x128xf32> -> vector<128x128xf32>
    %24 = vector.broadcast %2 : vector<1x128xf32> to vector<128x128xf32>
    %25 = arith.addf %23, %24 : vector<128x128xf32>
    %cst_12 = arith.constant 0.000000e+00 : f32
    %26 = vector.broadcast %cst_12 : f32 to vector<128x128xf32>
    %27 = arith.maximumf %25, %26 : vector<128x128xf32>
    %cst_13 = arith.constant dense<0.000000e+00> : vector<128xf32>
    %28 = vector.multi_reduction <add>, %27, %cst_13 [1] : vector<128x128xf32> to vector<128xf32>
    %29 = vector.shape_cast %28 : vector<128xf32> to vector<128x1xf32>
    %cst_14 = arith.constant 1.280000e+02 : f32
    %30 = vector.broadcast %cst_14 : f32 to vector<128x1xf32>
    %31 = arith.divf %29, %30 : vector<128x1xf32>
    %32 = vector.broadcast %31 : vector<128x1xf32> to vector<128x128xf32>
    %33 = arith.subf %27, %32 : vector<128x128xf32>
    %34 = arith.mulf %33, %33 : vector<128x128xf32>
    %cst_15 = arith.constant dense<0.000000e+00> : vector<128xf32>
    %35 = vector.multi_reduction <add>, %34, %cst_15 [1] : vector<128x128xf32> to vector<128xf32>
    %36 = vector.shape_cast %35 : vector<128xf32> to vector<128x1xf32>
    %cst_16 = arith.constant 1.280000e+02 : f32
    %37 = vector.broadcast %cst_16 : f32 to vector<128x1xf32>
    %38 = arith.divf %36, %37 : vector<128x1xf32>
    %cst_17 = arith.constant 9.99999974E-6 : f32
    %39 = vector.broadcast %cst_17 : f32 to vector<128x1xf32>
    %40 = arith.addf %38, %39 : vector<128x1xf32>
    %41 = math.rsqrt %40 : vector<128x1xf32>
    %42 = vector.broadcast %41 : vector<128x1xf32> to vector<128x128xf32>
    %43 = arith.mulf %33, %42 : vector<128x128xf32>
    %44 = arith.truncf %43 : vector<128x128xf32> to vector<128x128xbf16>
    %c0_18 = arith.constant 0 : index
    %c0_19 = arith.constant 0 : index
    %45 = vector.load %arg3[%c0_18, %c0_19] : memref<128x128xbf16, #tpu.memory_space<vmem>>, vector<128x128xbf16>
    %cst_20 = arith.constant dense<0.000000e+00> : vector<128x128xf32>
    %46 = tpu.matmul %44, %45, %cst_20 {dimension_numbers = #tpu.dot_dimension_numbers<[1], [0], [0], [1], [0, 0, 1, 1], [], []>} : vector<128x128xbf16>, vector<128x128xbf16>, vector<128x128xf32> -> vector<128x128xf32>
    %47 = vector.broadcast %3 : vector<1x128xf32> to vector<128x128xf32>
    %48 = arith.addf %46, %47 : vector<128x128xf32>
    %cst_21 = arith.constant 0.000000e+00 : f32
    %49 = vector.broadcast %cst_21 : f32 to vector<128x128xf32>
    %50 = arith.maximumf %48, %49 : vector<128x128xf32>
    %51 = arith.truncf %50 : vector<128x128xf32> to vector<128x128xbf16>
    %c0_22 = arith.constant 0 : index
    %c0_23 = arith.constant 0 : index
    %52 = vector.load %arg4[%c0_22, %c0_23] : memref<128x128xbf16, #tpu.memory_space<vmem>>, vector<128x128xbf16>
    %cst_24 = arith.constant dense<0.000000e+00> : vector<128x128xf32>
    %53 = tpu.matmul %51, %52, %cst_24 {dimension_numbers = #tpu.dot_dimension_numbers<[1], [0], [0], [1], [0, 0, 1, 1], [], []>} : vector<128x128xbf16>, vector<128x128xbf16>, vector<128x128xf32> -> vector<128x128xf32>
    %54 = vector.broadcast %4 : vector<1x128xf32> to vector<128x128xf32>
    %55 = arith.addf %53, %54 : vector<128x128xf32>
    %56 = arith.truncf %55 : vector<128x128xf32> to vector<128x128xbf16>
    %c0_25 = arith.constant 0 : index
    %c0_26 = arith.constant 0 : index
    %57 = vector.load %arg6[%c0_25, %c0_26] : memref<128x128xbf16, #tpu.memory_space<vmem>>, vector<128x128xbf16>
    tpu.vector_store %arg6[%c0_25, %c0_26], %56 {strides = array<i32>} : memref<128x128xbf16, #tpu.memory_space<vmem>>, vector<128x128xbf16>,
    return
  }
  func.func @transform_0(%arg0: i32) -> (i32, i32) {
    %c0_i32 = arith.constant 0 : i32
    %c0_i32_0 = arith.constant 0 : i32
    return %arg0, %c0_i32 : i32, i32
  }
  func.func @transform_1(%arg0: i32) -> (i32, i32) {
    %c0_i32 = arith.constant 0 : i32
    %c0_i32_0 = arith.constant 0 : i32
    %c0_i32_1 = arith.constant 0 : i32
    return %c0_i32, %c0_i32_0 : i32, i32
  }
  func.func @transform_2(%arg0: i32) -> (i32, i32) {
    %c0_i32 = arith.constant 0 : i32
    %c0_i32_0 = arith.constant 0 : i32
    %c0_i32_1 = arith.constant 0 : i32
    return %c0_i32, %c0_i32_0 : i32, i32
  }
  func.func @transform_3(%arg0: i32) -> (i32, i32) {
    %c0_i32 = arith.constant 0 : i32
    %c0_i32_0 = arith.constant 0 : i32
    %c0_i32_1 = arith.constant 0 : i32
    return %c0_i32, %c0_i32_0 : i32, i32
  }
  func.func @transform_4(%arg0: i32) -> (i32, i32) {
    %c0_i32 = arith.constant 0 : i32
    %c0_i32_0 = arith.constant 0 : i32
    %c0_i32_1 = arith.constant 0 : i32
    return %c0_i32, %c0_i32_0 : i32, i32
  }
  func.func @transform_5(%arg0: i32) -> (i32, i32) {
    %c0_i32 = arith.constant 0 : i32
    %c0_i32_0 = arith.constant 0 : i32
    return %arg0, %c0_i32 : i32, i32
  }
}

</mosaic_0001>

<bundles_post_ra>
// kernel: ff_forward.1
= control target key start
LH: loop header
LB: loop body
LE: loop exit
PB: predicated region body
PF: predicated region fallthrough
CT: control target
= control target key end

     0   :  { %10 = vsyncpa [#allocation3], 0  ;;  %s3064_s0 = inlined_call_operand.hbm [shape: bf16[256,128], index: 0, kind: input, shape index: {}]   ;;  %s3065_s1 = inlined_call_operand.hbm [shape: bf16[128,128], index: 1, kind: input, shape index: {}]   ;;  %s3066_s2 = inlined_call_operand.hbm [shape: bf16[128,128], index: 2, kind: input, shape index: {}]   ;;  %s3067_s3 = inlined_call_operand.hbm [shape: bf16[128,128], index: 3, kind: input, shape index: {}]   ;;  %s3068_s4 = inlined_call_operand.hbm [shape: f32[8,128], index: 4, kind: input, shape index: {}]   ;;  %s3069_s5 = inlined_call_operand.hbm [shape: bf16[256,128], index: 5, kind: output, shape index: {}]  }
   0x1   :  { %12 = vsyncpa [#allocation3 + $0x1], 0 }
   0x2   :  { %13 = vsyncpa [#allocation6], 0 }
   0x3   :  { %14 = vsyncpa [#allocation9], 0 }
   0x4   :  { %15 = vsyncpa [#allocation4], 0 }
   0x5   :  { %17 = vsyncpa [#allocation4 + $0x1], 0  ;;  %s2230_s18 = smov 0   ;;  %s2232_s19 = smov 0  }
   0x6   :  { %s2234_s20 = smov 0   ;;  %s2236_s21 = smov 0  }
   0x7 LB: > { %s2251_s22 = sadd.s32 4294967295, %s2189_s21   ;;  %s1550_s23 = sadd.s32 4294967294, %s2189_s21   ;;  %s2189_s21 = sphi %s2236_s21, %s3100_s21   ;;  %s2185_s20 = sphi %s2234_s20, %s3099_s20   ;;  %s2181_s19 = sphi %s2232_s19, %s3098_s19   ;;  %s2177_s18 = sphi %s2230_s18, %s3097_s18  }
   0x8   : > { %p43_p0 = scmp.ne.s32.totalorder %s2181_s19, %s2177_s18  ;;  %p44_p1 = scmp.eq.s32.totalorder %s2251_s22, 0 }
   0x9   : > { %p151_p2 = scmp.eq.s32.totalorder %s2251_s22, 1  ;;  %p157_p3 = scmp.eq.s32.totalorder %s1550_s23, 1 }
   0xa   : > { %p2260_p4 = por %p44_p1, %p43_p0  ;;  %p1551_p5 = scmp.ge.s32.totalorder %s2189_s21, 1 }
   0xb   : > { %p2265_p6 = por %p157_p3, %p43_p0  ;;  %p164_p7 = scmp.lt.s32.totalorder %s2189_s21, 3 }
   0xc   : > { %s175_s28 = sshll.u32 %s3065_s1, 4  ;;  %s2191_s30 = smov [#allocation5]   ;;  %s176_s28 = int_to_ptr.hbm [resolvable:$true] %s175_s28 }
   0xd   : > { %p2273_p8 = pnand %p1551_p5, %p164_p7  ;;  %s177_s6 = sshll.u32 %s2191_s30, 4  ;;  %s178_s6 = int_to_ptr.vmem [resolvable:$true] %s177_s6 }
   0xe   : > { %s203_s10 = sshll.u32 %s3067_s3, 4  ;;  %s3070_s11 = smov 64   ;;  %s204_s10 = int_to_ptr.hbm [resolvable:$true] %s203_s10 }
   0xf   : > { %p1824_p9 = pneg %p2273_p8  ;;  %s2193_s12 = smov 4  }
  0x10   : > { %s2194_s13 = smov [#allocation8]   ;;  %s189_s17 = sshll.u32 %s3066_s2, 4  ;;  %s190_s17 = int_to_ptr.hbm [resolvable:$true] %s189_s17 }
  0x11   : > { %p2281_p10 = pnand %p1824_p9, %p44_p1  ;;  %s205_s14 = sshll.u32 %s2194_s13, 4  ;;  %s206_s14 = int_to_ptr.vmem [resolvable:$true] %s205_s14 }
  0x12   : > { %s218_s27 = sshll.u32 %s3068_s4, 4  ;;  %s2313_s9 = sadd.s32 1, %s2189_s21   ;;  %s219_s27 = int_to_ptr.hbm [resolvable:$true] %s218_s27 }
  0x13   : > { %1827 = dma.hbm_to_vmem [thread:$0]  (!%p2281_p10), %s176_s28, 1024, %s178_s6, [#allocation6], %s3070_s11, %s3070_s11, %s2193_s12  }
  0x14   : > { %1833 = dma.hbm_to_vmem [thread:$0]  (!%p2281_p10), %s204_s10, 1024, %s206_s14, [#allocation9], %s3070_s11, %s3070_s11, %s2193_s12  }
  0x15   : > { %s2195_s28 = smov [#allocation7]   ;;  %s2196_s6 = smov [#allocation10]  }
  0x16   : > { %s191_s30 = sshll.u32 %s2195_s28, 4  ;;  %s220_s8 = sshll.u32 %s2196_s6, 4  ;;  %s192_s30 = int_to_ptr.vmem [resolvable:$true] %s191_s30  ;;  %s221_s8 = int_to_ptr.vmem [resolvable:$true] %s220_s8 }
  0x17   : > { %1830 = dma.hbm_to_vmem [thread:$0]  (!%p2281_p10), %s190_s17, 1024, %s192_s30, [#allocation6], %s3070_s11, %s3070_s11, %s2193_s12  }
  0x18   : > { %1836 = dma.hbm_to_vmem [thread:$0]  (!%p2281_p10), %s219_s27, 128, %s221_s8, [#allocation9]  }
  0x19   : > { %s30_s10 = sadd.s32 1, %s2185_s20  ;;  %s27_s13 = ssub.s32 %s2189_s21, %s2313_s9 }
  0x1a   : > { %p37_p12 = scmp.ne.s32.totalorder %s2185_s20, %s2181_s19  ;;  %p28_p13 = scmp.eq.s32.totalorder %s27_s13, 0 }
  0x1b   : > { %p38_p0 = scmp.eq.s32.totalorder %s2189_s21, 0  ;;  %p1849_p5 = scmp.lt.s32.totalorder %s2189_s21, 2 }
  0x1c   : > { %p2323_p3 = por %p151_p2, %p37_p12  ;;  %s231_s16 = sand.u32 1, %s2185_s20  }
  0x1d   : > { %s2329_s15 = scalar_select %p28_p13, %s2185_s20, %s30_s10  }
  0x1e   : > { %p39_p7 = por %p38_p0, %p37_p12  ;;  %s1557_s7 = sshll.u32 %s231_s16, 6 }
  0x1f   : > { %s1668_s17 = sshll.u32 %s2189_s21, 6  ;;  %s235_s28 = scalar_lea.vmem [#allocation2], %s1557_s7 }
  0x20   : > { %s240_s27 = scalar_lea.hbm %s3064_s0, %s1668_s17  ;;  %s243_s30 = sshll.u32 %s235_s28, 4  ;;  %s244_s30 = int_to_ptr.vmem [resolvable:$true] %s243_s30 }
  0x21   : > { %s241_s6 = sshll.u32 %s240_s27, 4  ;;  %p2336_p2 = pnand %p1849_p5, %p39_p7  ;;  %s242_s6 = int_to_ptr.hbm [resolvable:$true] %s241_s6 }
  0x22   : > { %s232_s10 = scalar_lea.sflag [#allocation3], %s231_s16  ;;  %s2085_s13 = sshra.s32 %s242_s6, 4  ;;  %s2086_s13 = int_to_ptr.hbm [resolvable:$true] %s2085_s13 }
  0x23   : > { %s2087_s11 = scalar_lea.hbm %s2086_s13, 64  ;;  %p2089_p10 = pneg %p2336_p2 }
  0x24   : > { %p2088_p9 = scmp.ne.s32.totalorder %s2086_s13, %s2087_s11  ;;  %s2092_s23 = scalar_lea.hbm %s3064_s0, 128 }
  0x25   : > { %p2093_p0 = scmp.lt.s32.totalorder %s2086_s13, %s3064_s0  ;;  %p2094_p5 = scmp.lt.s32.totalorder %s2092_s23, %s2087_s11 }
  0x26   : > { %p2090_p12 = pnand %p2089_p10, %p2088_p9 }
  0x27   : > { %p2095_p7 = por %p2094_p5, %p2093_p0 }
  0x28   : > { %p2091_p13 = pneg %p2090_p12 }
  0x2a   : > { %p2096_p11 = pnand %p2095_p7, %p2091_p13 }
  0x2c   : > { %2099 = shalt.err (!%p2096_p11)
}
  0x2d   : > { %s3077_s16 = smov 64   ;;  %255 = sbr.rel (%p2273_p8) target bundleno = 1181 (0x49d), region = 40 }
  0x2e   : > { %1840 = dma.hbm_to_vmem [thread:$0]  (!%p2336_p2), %s242_s6, 1024, %s244_s30, %s232_s10, %s3077_s16, %s3077_s16, %s2193_s12  }
  0x2f   : > { %s2356_s28 = sand.u32 (!%p2273_p8), 1, %s2181_s19  }
  0x30   : > { %s1561_s11 = sshll.u32 (!%p2273_p8), %s2356_s28, 6  ;;  %s258_s13 = scalar_lea.sflag (!%p2273_p8), [#allocation3], %s2356_s28 }
  0x31   : > { %s2362_s17 = scalar_lea.vmem (!%p2273_p8), [#allocation2], %s1561_s11 }
  0x32   : > { %2160 = dma.done.wait (%p2260_p4), %s258_s13, 1024  }
  0x33   : > { %2162 = vsyncadd (%p2260_p4), %s258_s13, 4294966272 }
  0x34   : > { %2164 = dma.done.wait (%p44_p1), [#allocation6], 2048  }
  0x35   : > { %2166 = vsyncadd (%p44_p1), [#allocation6], 4294965248 }
  0x36   : > { %2168 = dma.done.wait (%p44_p1), [#allocation9], 1152  }
  0x37   : > { %2170 = vsyncadd (%p44_p1), [#allocation9], 4294966144  ;;  %v1695_v0 = vld [vmem:[%s2362_s17] sm:$0xff]   ;;  %v1766_v1 = vld [vmem:[%s2362_s17 + $0x8] sm:$0xff]   ;;  %v2197_v13 = vmov 128.0   ;;  %s3002_s24 = scalar_lea.vmem [#allocation11], %s1561_s11 }
  0x38   : > { %v2379_v2 = vld [vmem:[%s2362_s17 + $0x10] sm:$0xff]   ;;  %v1696_v3 = vunpack.c.l.bf16 %v1695_v0  ;;  %v1700_v4 = vunpack.c.l.bf16 %v1766_v1  ;;  %v1697_v6 = vunpack.c.h.bf16 %v1695_v0  ;;  %v1701_v7 = vunpack.c.h.bf16 %v1766_v1  ;;  %v2388_v9 = vld [vmem:[%s2362_s17 + $0x18] sm:$0xff]   ;;  %v2400_v16 = vld [vmem:[%s2362_s17 + $0x20] sm:$0xff]   ;;  %s1693_s29 = sshll.u32 %s2251_s22, 6  ;;  %s1436_s8 = sshll.u32 %s3002_s24, 4  ;;  %s1437_s8 = int_to_ptr.vmem [resolvable:$true] %s1436_s8 }
  0x39   : > { %v1704_v5 = vunpack.c.l.bf16 %v2379_v2  ;;  %v1705_v8 = vunpack.c.h.bf16 %v2379_v2  ;;  %v1708_v10 = vunpack.c.l.bf16 %v2388_v9  ;;  %v2394_v11 = vld [vmem:[%s2362_s17 + $0x30] sm:$0xff]   ;;  %1899 = vrcp.f32 %v2197_v13  ;;  %v2406_v20 = vld [vmem:[%s2362_s17 + $0x38] sm:$0xff]   ;;  %v2414_v24 = vld [vmem:[%s2362_s17 + $0x28] sm:$0xff]   ;;  %s1435_s6 = scalar_lea.hbm %s3069_s5, %s1693_s29  ;;  %s1424_s22 = scalar_lea.sflag [#allocation4], %s2356_s28 }
  0x3a   : > { %346 = vadd.xlane.f32.xlu0 %v1696_v3  ;;  %350 = vadd.xlane.f32.xlu1 %v1700_v4  ;;  %v1721_v12 = vunpack.c.h.bf16 %v2394_v11  ;;  %v1712_v17 = vunpack.c.l.bf16 %v2400_v16  ;;  %v1725_v21 = vunpack.c.h.bf16 %v2406_v20  ;;  %v1716_v26 = vunpack.c.l.bf16 %v2414_v24  ;;  %v1676_v63 = vld [vmem:[#allocation5 + $0x38] sm:$0xff]  ;;  %v1675_v0 = vld [vmem:[#allocation5 + $0x30] sm:$0xff]  ;;  %v1674_v1 = vld [vmem:[#allocation5 + $0x28] sm:$0xff]  ;;  %s1438_s10 = sshll.u32 %s1435_s6, 4  ;;  %s2135_s16 = scalar_lea.hbm %s3069_s5, 128  ;;  %s1439_s10 = int_to_ptr.hbm [resolvable:$true] %s1438_s10 }
  0x3b   : > { %354 = vadd.xlane.f32.xlu2 %v1704_v5  ;;  %v1709_v34 = vunpack.c.h.bf16 %v2388_v9  ;;  %v1720_v41 = vunpack.c.l.bf16 %v2394_v11  ;;  %v1713_v44 = vunpack.c.h.bf16 %v2400_v16  ;;  %v1724_v50 = vunpack.c.l.bf16 %v2406_v20  ;;  %746 = vmatpush.bf16.msra.mxu0 %v1676_v63  ;;  %v1673_v2 = vld [vmem:[#allocation5 + $0x20] sm:$0xff]  ;;  %s2129_s7 = sshra.s32 %s1439_s10, 4  ;;  %s2130_s7 = int_to_ptr.hbm [resolvable:$true] %s2129_s7 }
  0x3c   : > { %v1717_v54 = vunpack.c.h.bf16 %v2414_v24  ;;  %1780 = vmatpush.bf16.msra.mxu3 %v1676_v63  ;;  %s2131_s23 = scalar_lea.hbm %s2130_s7, 64  ;;  %p2136_p11 = scmp.lt.s32.totalorder %s2130_s7, %s3069_s5 }
  0x3d   : > { %p2132_p1 = scmp.ne.s32.totalorder %s2130_s7, %s2131_s23  ;;  %p2137_p2 = scmp.lt.s32.totalorder %s2135_s16, %s2131_s23 }
  0x3f   : > { %v1900_v14 = vpop.eup %1899  ;;  %747 = vmatpush.bf16.msra.mxu0 %v1675_v0  ;;  %p2133_p4 = pnand %p2132_p1, %p2323_p3  ;;  %p2138_p9 = por %p2137_p2, %p2136_p11 }
  0x40   : > { %v379_v15 = vmul.f32 128.0, %v1900_v14  ;;  %vm383_vm0 = vweird.f32 %v1900_v14  ;;  %1781 = vmatpush.bf16.msra.mxu3 %v1675_v0 }
  0x41   : > { %p2134_p8 = pneg %p2133_p4 }
  0x42   : > { %348 = vadd.xlane.f32.xlu0 %v1697_v6  ;;  %352 = vadd.xlane.f32.xlu1 %v1701_v7  ;;  %v380_v18 = vsub.f32 1.0, %v379_v15 }
  0x43   : > { %356 = vadd.xlane.f32.xlu2 %v1705_v8  ;;  %748 = vmatpush.bf16.msra.mxu0 %v1674_v1  ;;  %p2139_p10 = pnand %p2138_p9, %p2134_p8 }
  0x44   : > { %v381_v19 = vmul.f32 %v1900_v14, %v380_v18  ;;  %1782 = vmatpush.bf16.msra.mxu3 %v1674_v1 }
  0x46   : > { %v382_v22 = vadd.f32 %v1900_v14, %v381_v19 }
  0x47   : > { %749 = vmatpush.bf16.msra.mxu0 %v1673_v2 }
  0x48   : > { %v2411_v23 = vsel %vm383_vm0, %v1900_v14, %v382_v22  ;;  %1783 = vmatpush.bf16.msra.mxu3 %v1673_v2 }
  0x4b   : > { %358 = vadd.xlane.f32.xlu2 %v1708_v10 }
  0x53   : > { %372 = vadd.xlane.f32.xlu2 %v1721_v12 }
  0x5b   : > { %362 = vadd.xlane.f32.xlu2 %v1712_v17 }
  0x63   : > { %376 = vadd.xlane.f32.xlu2 %v1725_v21 }
  0x6b   : > { %366 = vadd.xlane.f32.xlu2 %v1716_v26 }
  0xad   : > { %v347_v25 = vpop.xlane.xlu0 %346  ;;  %v351_v30 = vpop.xlane.xlu1 %350 }
  0xae   : > { %v385_v27 = vmul.f32 %v2411_v23, %v347_v25  ;;  %v387_v35 = vmul.f32 %v2411_v23, %v351_v30  ;;  %v355_v39 = vpop.xlane.xlu2 %354 }
  0xaf   : > { %v389_v46 = vmul.f32 %v2411_v23, %v355_v39 }
  0xb0   : > { %v2420_v28 = vsub.f32 %v1696_v3, %v385_v27  ;;  %v2433_v37 = vsub.f32 %v1700_v4, %v387_v35  ;;  %v1672_v3 = vld [vmem:[#allocation5 + $0x18] sm:$0xff]  ;;  %v1671_v4 = vld [vmem:[#allocation5 + $0x10] sm:$0xff] }
  0xb1   : > { %v2451_v48 = vsub.f32 %v1704_v5, %v389_v46  ;;  %750 = vmatpush.bf16.msra.mxu0 %v1672_v3  ;;  %1784 = vmatpush.bf16.msra.mxu3 %v1672_v3  ;;  %v1670_v5 = vld [vmem:[#allocation5 + $0x8] sm:$0xff] }
  0xb2   : > { %v417_v29 = vmul.f32 %v2420_v28, %v2420_v28  ;;  %v419_v40 = vmul.f32 %v2433_v37, %v2433_v37 }
  0xb3   : > { %v421_v49 = vmul.f32 %v2451_v48, %v2451_v48 }
  0xb4   : > { %433 = vadd.xlane.f32.xlu0 %v417_v29 }
  0xb5   : > { %v349_v31 = vpop.xlane.xlu0 %348  ;;  %v353_v38 = vpop.xlane.xlu1 %352  ;;  %751 = vmatpush.bf16.msra.mxu0 %v1671_v4  ;;  %1785 = vmatpush.bf16.msra.mxu3 %v1671_v4 }
  0xb6   : > { %v386_v32 = vmul.f32 %v2411_v23, %v349_v31  ;;  %v388_v42 = vmul.f32 %v2411_v23, %v353_v38  ;;  %v357_v47 = vpop.xlane.xlu2 %356 }
  0xb7   : > { %v390_v51 = vmul.f32 %v2411_v23, %v357_v47 }
  0xb8   : > { %v2425_v33 = vsub.f32 %v1697_v6, %v386_v32  ;;  %v2441_v43 = vsub.f32 %v1701_v7, %v388_v42  ;;  %v1669_v6 = vld [vmem:[#allocation5] sm:$0xff] }
  0xb9   : > { %v2461_v53 = vsub.f32 %v1705_v8, %v390_v51  ;;  %752 = vmatpush.bf16.msra.mxu0 %v1670_v5  ;;  %1786 = vmatpush.bf16.msra.mxu3 %v1670_v5 }
  0xba   : > { %v418_v36 = vmul.f32 %v2425_v33, %v2425_v33  ;;  %v420_v45 = vmul.f32 %v2441_v43, %v2441_v43 }
  0xbb   : > { %v422_v55 = vmul.f32 %v2461_v53, %v2461_v53 }
  0xbc   : > { %360 = vadd.xlane.f32.xlu0 %v1709_v34  ;;  %435 = vadd.xlane.f32.xlu1 %v418_v36 }
  0xbd   : > { %753 = vmatpush.bf16.msra.mxu0 %v1669_v6  ;;  %1787 = vmatpush.bf16.msra.mxu3 %v1669_v6 }
  0xbe   : > { %v359_v52 = vpop.xlane.xlu2 %358 }
  0xbf   : > { %v391_v56 = vmul.f32 %v2411_v23, %v359_v52 }
  0xc1   : > { %v2471_v57 = vsub.f32 %v1708_v10, %v391_v56 }
  0xc3   : > { %v423_v59 = vmul.f32 %v2471_v57, %v2471_v57 }
  0xc4   : > { %437 = vadd.xlane.f32.xlu0 %v419_v40  ;;  %370 = vadd.xlane.f32.xlu1 %v1720_v41 }
  0xc6   : > { %v373_v58 = vpop.xlane.xlu2 %372 }
  0xc7   : > { %v398_v60 = vmul.f32 %v2411_v23, %v373_v58 }
  0xc9   : > { %v2478_v61 = vsub.f32 %v1721_v12, %v398_v60 }
  0xcb   : > { %v430_v62 = vmul.f32 %v2478_v61, %v2478_v61 }
  0xcc   : > { %364 = vadd.xlane.f32.xlu0 %v1713_v44  ;;  %439 = vadd.xlane.f32.xlu1 %v420_v45 }
  0xce   : > { %v363_v12 = vpop.xlane.xlu2 %362 }
  0xcf   : > { %v393_v27 = vmul.f32 %v2411_v23, %v363_v12 }
  0xd1   : > { %v2494_v35 = vsub.f32 %v1712_v17, %v393_v27 }
  0xd3   : > { %v425_v46 = vmul.f32 %v2494_v35, %v2494_v35 }
  0xd4   : > { %441 = vadd.xlane.f32.xlu0 %v421_v49  ;;  %374 = vadd.xlane.f32.xlu1 %v1724_v50 }
  0xd6   : > { %v377_v31 = vpop.xlane.xlu2 %376 }
  0xd7   : > { %v400_v17 = vmul.f32 %v2411_v23, %v377_v31 }
  0xd9   : > { %v2512_v11 = vsub.f32 %v1725_v21, %v400_v17 }
  0xdb   : > { %v432_v3 = vmul.f32 %v2512_v11, %v2512_v11 }
  0xdc   : > { %368 = vadd.xlane.f32.xlu0 %v1717_v54  ;;  %443 = vadd.xlane.f32.xlu1 %v422_v55 }
  0xe4   : > { %445 = vadd.xlane.f32.xlu1 %v423_v59 }
  0xec   : > { %459 = vadd.xlane.f32.xlu1 %v430_v62 }
 0x127   : > { %v434_v7 = vpop.xlane.xlu0 %433 }
 0x128   : > { %v465_v8 = vmul.f32 %v434_v7, %v2411_v23 }
 0x12a   : > { %v481_v10 = vadd.f32 1e-05, %v465_v8 }
 0x12c   : > { %1901 = vrsqrt.f32 %v481_v10  ;;  %vm503_vm2 = vweird.f32 %v481_v10 }
 0x12f   : > { %v436_v13 = vpop.xlane.xlu1 %435  ;;  %v361_v14 = vpop.xlane.xlu0 %360 }
 0x130   : > { %v466_v15 = vmul.f32 %v436_v13, %v2411_v23  ;;  %v392_v18 = vmul.f32 %v2411_v23, %v361_v14 }
 0x132   : > { %v1902_v19 = vpop.eup %1901  ;;  %v482_v22 = vadd.f32 1e-05, %v466_v15  ;;  %v2487_v25 = vsub.f32 %v1709_v34, %v392_v18 }
 0x133   : > { %v498_v29 = vmul.f32 %v1902_v19, %v481_v10  ;;  %vm504_vm1 = vweird.f32 %v1902_v19 }
 0x134   : > { %1903 = vrsqrt.f32 %v482_v22  ;;  %v424_v30 = vmul.f32 %v2487_v25, %v2487_v25  ;;  %vm2518_vm4 = vmor %vm503_vm2, %vm504_vm1  ;;  %vm513_vm5 = vweird.f32 %v482_v22 }
 0x135   : > { %v499_v32 = vmul.f32 %v1902_v19, %v498_v29 }
 0x136   : > { %447 = vadd.xlane.f32.xlu2 %v424_v30 }
 0x137   : > { %v500_v36 = vmul.f32 0.5, %v499_v32  ;;  %v371_v38 = vpop.xlane.xlu1 %370  ;;  %v438_v39 = vpop.xlane.xlu0 %437 }
 0x138   : > { %v397_v9 = vmul.f32 %v2411_v23, %v371_v38  ;;  %v467_v34 = vmul.f32 %v438_v39, %v2411_v23 }
 0x139   : > { %v501_v47 = vsub.f32 1.5, %v500_v36 }
 0x13a   : > { %v1904_v40 = vpop.eup %1903  ;;  %v2500_v42 = vsub.f32 %v1720_v41, %v397_v9  ;;  %v2502_v45 = vadd.f32 1e-05, %v467_v34  ;;  %v367_v41 = vpop.xlane.xlu2 %366 }
 0x13b   : > { %v508_v49 = vmul.f32 %v1904_v40, %v482_v22  ;;  %v502_v59 = vmul.f32 %v1902_v19, %v501_v47  ;;  %vm514_vm3 = vweird.f32 %v1904_v40  ;;  %v395_v4 = vmul.f32 %v2411_v23, %v367_v41 }
 0x13c   : > { %1905 = vrsqrt.f32 %v2502_v45  ;;  %v429_v51 = vmul.f32 %v2500_v42, %v2500_v42  ;;  %vm515_vm6 = vmor %vm513_vm5, %vm514_vm3  ;;  %vm523_vm8 = vweird.f32 %v2502_v45 }
 0x13d   : > { %v509_v52 = vmul.f32 %v1904_v40, %v508_v49  ;;  %v506_v6 = vsel %vm2518_vm4, %v1902_v19, %v502_v59  ;;  %v2538_v10 = vsub.f32 %v1716_v26, %v395_v4 }
 0x13e   : > { %457 = vadd.xlane.f32.xlu0 %v429_v51  ;;  %449 = vadd.xlane.f32.xlu2 %v425_v46  ;;  %v657_v12 = vmul.f32 %v506_v6, %v2420_v28 }
 0x13f   : > { %v510_v55 = vmul.f32 0.5, %v509_v52  ;;  %v440_v56 = vpop.xlane.xlu1 %439  ;;  %v365_v58 = vpop.xlane.xlu0 %364  ;;  %v427_v26 = vmul.f32 %v2538_v10, %v2538_v10 }
 0x140   : > { %v468_v60 = vmul.f32 %v440_v56, %v2411_v23  ;;  %v394_v62 = vmul.f32 %v2411_v23, %v365_v58 }
 0x141   : > { %v511_v63 = vsub.f32 1.5, %v510_v55 }
 0x142   : > { %v2516_v0 = vpop.eup %1905  ;;  %v484_v21 = vadd.f32 1e-05, %v468_v60  ;;  %v2524_v2 = vsub.f32 %v1713_v44, %v394_v62 }
 0x143   : > { %v518_v5 = vmul.f32 %v2516_v0, %v2502_v45  ;;  %v512_v7 = vmul.f32 %v1904_v40, %v511_v63  ;;  %vm524_vm7 = vweird.f32 %v2516_v0 }
 0x144   : > { %1907 = vrsqrt.f32 %v484_v21  ;;  %v426_v16 = vmul.f32 %v2524_v2, %v2524_v2  ;;  %vm525_vm10 = vmor %vm523_vm8, %vm524_vm7  ;;  %vm533_vm11 = vweird.f32 %v484_v21 }
 0x145   : > { %v519_v44 = vmul.f32 %v2516_v0, %v518_v5  ;;  %v516_v8 = vsel %vm515_vm6, %v1904_v40, %v512_v7 }
 0x146   : > { %463 = vadd.xlane.f32.xlu2 %v432_v3  ;;  %451 = vadd.xlane.f32.xlu0 %v426_v16  ;;  %v658_v13 = vmul.f32 %v516_v8, %v2425_v33 }
 0x147   : > { %v520_v14 = vmul.f32 0.5, %v519_v44  ;;  %v375_v15 = vpop.xlane.xlu1 %374  ;;  %v442_v18 = vpop.xlane.xlu0 %441 }
 0x148   : > { %v399_v19 = vmul.f32 %v2411_v23, %v375_v15  ;;  %v469_v22 = vmul.f32 %v442_v18, %v2411_v23  ;;  %v673_v27 = vpack.c.bf16 %v658_v13, %v657_v12 }
 0x149   : > { %v521_v28 = vsub.f32 1.5, %v520_v14 }
 0x14a   : > { %v1908_v29 = vpop.eup %1907  ;;  %v2546_v30 = vsub.f32 %v1724_v50, %v399_v19  ;;  %v485_v31 = vadd.f32 1e-05, %v469_v22  ;;  %754 = vmatmul.bf16.vlgmr.msra.gmra.mxu0 %v673_v27 }
 0x14b   : > { %v528_v33 = vmul.f32 %v1908_v29, %v484_v21  ;;  %v522_v39 = vmul.f32 %v2516_v0, %v521_v28  ;;  %vm534_vm9 = vweird.f32 %v1908_v29 }
 0x14c   : > { %1909 = vrsqrt.f32 %v485_v31  ;;  %v431_v32 = vmul.f32 %v2546_v30, %v2546_v30  ;;  %vm535_vm12 = vmor %vm533_vm11, %vm534_vm9  ;;  %vm543_vm13 = vweird.f32 %v485_v31 }
 0x14d   : > { %v529_v36 = vmul.f32 %v1908_v29, %v528_v33  ;;  %v526_v51 = vsel %vm525_vm10, %v2516_v0, %v522_v39 }
 0x14e   : > { %461 = vadd.xlane.f32.xlu1 %v431_v32  ;;  %453 = vadd.xlane.f32.xlu0 %v427_v26  ;;  %v659_v56 = vmul.f32 %v526_v51, %v2433_v37 }
 0x14f   : > { %v530_v38 = vmul.f32 0.5, %v529_v36  ;;  %v444_v20 = vpop.xlane.xlu1 %443  ;;  %v369_v50 = vpop.xlane.xlu0 %368 }
 0x150   : > { %v470_v9 = vmul.f32 %v444_v20, %v2411_v23  ;;  %v396_v34 = vmul.f32 %v2411_v23, %v369_v50 }
 0x151   : > { %v531_v40 = vsub.f32 1.5, %v530_v38 }
 0x152   : > { %v1910_v46 = vpop.eup %1909  ;;  %v486_v17 = vadd.f32 1e-05, %v470_v9  ;;  %v2559_v47 = vsub.f32 %v1717_v54, %v396_v34 }
 0x153   : > { %v538_v49 = vmul.f32 %v1910_v46, %v485_v31  ;;  %v532_v52 = vmul.f32 %v1908_v29, %v531_v40  ;;  %vm544_vm14 = vweird.f32 %v1910_v46 }
 0x154   : > { %1911 = vrsqrt.f32 %v486_v17  ;;  %v428_v41 = vmul.f32 %v2559_v47, %v2559_v47  ;;  %vm553_vm15 = vweird.f32 %v486_v17  ;;  %vm545_vm1 = vmor %vm543_vm13, %vm544_vm14 }
 0x155   : > { %v539_v45 = vmul.f32 %v1910_v46, %v538_v49  ;;  %v536_v55 = vsel %vm535_vm12, %v1908_v29, %v532_v52 }
 0x156   : > { %455 = vadd.xlane.f32.xlu1 %v428_v41  ;;  %v660_v58 = vmul.f32 %v536_v55, %v2441_v43 }
 0x157   : > { %v540_v24 = vmul.f32 0.5, %v539_v45  ;;  %v446_v7 = vpop.xlane.xlu1 %445 }
 0x158   : > { %v674_v54 = vpack.c.bf16 %v660_v58, %v659_v56  ;;  %v471_v16 = vmul.f32 %v446_v7, %v2411_v23 }
 0x159   : > { %v541_v60 = vsub.f32 1.5, %v540_v24 }
 0x15a   : > { %v1912_v59 = vpop.eup %1911  ;;  %759 = vmatmul.bf16.gmra.mxu0 %v674_v54  ;;  %v487_v44 = vadd.f32 1e-05, %v471_v16 }
 0x15b   : > { %v548_v62 = vmul.f32 %v1912_v59, %v486_v17  ;;  %v542_v1 = vmul.f32 %v1910_v46, %v541_v60  ;;  %vm554_vm0 = vweird.f32 %v1912_v59 }
 0x15c   : > { %vm555_vm2 = vmor %vm553_vm15, %vm554_vm0  ;;  %1913 = vrsqrt.f32 %v487_v44  ;;  %vm563_vm3 = vweird.f32 %v487_v44 }
 0x15d   : > { %v549_v63 = vmul.f32 %v1912_v59, %v548_v62  ;;  %v546_v3 = vsel %vm545_vm1, %v1910_v46, %v542_v1 }
 0x15e   : > { %v661_v43 = vmul.f32 %v546_v3, %v2451_v48 }
 0x15f   : > { %v550_v0 = vmul.f32 0.5, %v549_v63  ;;  %v460_v8 = vpop.xlane.xlu1 %459 }
 0x160   : > { %v478_v12 = vmul.f32 %v460_v8, %v2411_v23 }
 0x161   : > { %v551_v21 = vsub.f32 1.5, %v550_v0 }
 0x162   : > { %v2570_v13 = vadd.f32 1e-05, %v478_v12  ;;  %v1914_v14 = vpop.eup %1913 }
 0x163   : > { %v552_v4 = vmul.f32 %v1912_v59, %v551_v21  ;;  %v558_v15 = vmul.f32 %v1914_v14, %v487_v44  ;;  %vm564_vm4 = vweird.f32 %v1914_v14 }
 0x164   : > { %1915 = vrsqrt.f32 %v2570_v13  ;;  %vm2587_vm5 = vmor %vm563_vm3, %vm564_vm4  ;;  %vm633_vm9 = vweird.f32 %v2570_v13 }
 0x165   : > { %v556_v37 = vsel %vm555_vm2, %v1912_v59, %v552_v4  ;;  %v559_v19 = vmul.f32 %v1914_v14, %v558_v15 }
 0x166   : > { %v662_v5 = vmul.f32 %v556_v37, %v2461_v53 }
 0x167   : > { %v560_v27 = vmul.f32 0.5, %v559_v19 }
 0x168   : > { %v675_v6 = vpack.c.bf16 %v662_v5, %v661_v43 }
 0x169   : > { %v561_v20 = vsub.f32 1.5, %v560_v27 }
 0x16a   : > { %764 = vmatmul.bf16.gmra.mxu0 %v675_v6  ;;  %v2574_v22 = vpop.eup %1915 }
 0x16b   : > { %v628_v29 = vmul.f32 %v2574_v22, %v2570_v13  ;;  %v562_v49 = vmul.f32 %v1914_v14, %v561_v20  ;;  %vm634_vm10 = vweird.f32 %v2574_v22 }
 0x16c   : > { %vm2616_vm11 = vmor %vm633_vm9, %vm634_vm10 }
 0x16d   : > { %v629_v50 = vmul.f32 %v2574_v22, %v628_v29  ;;  %v566_v60 = vsel %vm2587_vm5, %v1914_v14, %v562_v49 }
 0x16e   : > { %v663_v3 = vmul.f32 %v566_v60, %v2471_v57  ;;  %v2620_v57 = vld [vmem:[#allocation10] ss:$0 sm:$0xff] }
 0x16f   : > { %v630_v34 = vmul.f32 0.5, %v629_v50 }
 0x171   : > { %v631_v54 = vsub.f32 1.5, %v630_v34 }
 0x173   : > { %v632_v5 = vmul.f32 %v2574_v22, %v631_v54 }
 0x175   : > { %v636_v19 = vsel %vm2616_vm11, %v2574_v22, %v632_v5 }
 0x176   : > { %v670_v50 = vmul.f32 %v636_v19, %v2478_v61 }
 0x1a9   : > { %v448_v18 = vpop.xlane.xlu2 %447 }
 0x1aa   : > { %v472_v48 = vmul.f32 %v448_v18, %v2411_v23 }
 0x1ac   : > { %v488_v53 = vadd.f32 1e-05, %v472_v48 }
 0x1ae   : > { %1917 = vrsqrt.f32 %v488_v53  ;;  %vm573_vm6 = vweird.f32 %v488_v53 }
 0x1b1   : > { %v450_v31 = vpop.xlane.xlu2 %449  ;;  %v458_v26 = vpop.xlane.xlu0 %457 }
 0x1b2   : > { %v473_v28 = vmul.f32 %v450_v31, %v2411_v23  ;;  %v477_v33 = vmul.f32 %v458_v26, %v2411_v23 }
 0x1b4   : > { %v1918_v32 = vpop.eup %1917  ;;  %v2580_v36 = vadd.f32 1e-05, %v473_v28  ;;  %v2582_v38 = vadd.f32 1e-05, %v477_v33 }
 0x1b5   : > { %v568_v39 = vmul.f32 %v1918_v32, %v488_v53  ;;  %vm574_vm7 = vweird.f32 %v1918_v32 }
 0x1b6   : > { %1919 = vrsqrt.f32 %v2580_v36  ;;  %vm575_vm8 = vmor %vm573_vm6, %vm574_vm7  ;;  %vm623_vm13 = vweird.f32 %v2582_v38  ;;  %vm583_vm15 = vweird.f32 %v2580_v36 }
 0x1b7   : > { %v569_v9 = vmul.f32 %v1918_v32, %v568_v39  ;;  %1921 = vrsqrt.f32 %v2582_v38 }
 0x1b9   : > { %v570_v40 = vmul.f32 0.5, %v569_v9  ;;  %v464_v46 = vpop.xlane.xlu2 %463  ;;  %v452_v17 = vpop.xlane.xlu0 %451 }
 0x1ba   : > { %v480_v52 = vmul.f32 %v464_v46, %v2411_v23  ;;  %v474_v41 = vmul.f32 %v452_v17, %v2411_v23 }
 0x1bb   : > { %v571_v45 = vsub.f32 1.5, %v570_v40 }
 0x1bc   : > { %v2593_v55 = vpop.eup %1919  ;;  %v2595_v56 = vadd.f32 1e-05, %v480_v52  ;;  %v2597_v58 = vadd.f32 1e-05, %v474_v41 }
 0x1bd   : > { %v1922_v24 = vpop.eup %1921  ;;  %v578_v59 = vmul.f32 %v2593_v55, %v2580_v36  ;;  %v572_v62 = vmul.f32 %v1918_v32, %v571_v45  ;;  %vm584_vm0 = vweird.f32 %v2593_v55 }
 0x1be   : > { %v618_v63 = vmul.f32 %v1922_v24, %v2582_v38  ;;  %1923 = vrsqrt.f32 %v2595_v56  ;;  %vm624_vm12 = vweird.f32 %v1922_v24  ;;  %vm593_vm1 = vweird.f32 %v2597_v58  ;;  %vm2654_vm3 = vmor %vm583_vm15, %vm584_vm0 }
 0x1bf   : > { %v579_v0 = vmul.f32 %v2593_v55, %v578_v59  ;;  %1925 = vrsqrt.f32 %v2597_v58  ;;  %v576_v1 = vsel %vm575_vm8, %v1918_v32, %v572_v62  ;;  %vm625_vm14 = vmor %vm623_vm13, %vm624_vm12  ;;  %vm653_vm4 = vweird.f32 %v2595_v56 }
 0x1c0   : > { %v619_v21 = vmul.f32 %v1922_v24, %v618_v63  ;;  %v664_v4 = vmul.f32 %v576_v1, %v2487_v25 }
 0x1c1   : > { %v462_v37 = vpop.xlane.xlu1 %461  ;;  %v454_v43 = vpop.xlane.xlu0 %453  ;;  %v580_v12 = vmul.f32 0.5, %v579_v0 }
 0x1c2   : > { %v620_v6 = vmul.f32 0.5, %v619_v21  ;;  %v479_v7 = vmul.f32 %v462_v37, %v2411_v23  ;;  %v475_v16 = vmul.f32 %v454_v43, %v2411_v23  ;;  %v676_v44 = vpack.c.bf16 %v664_v4, %v663_v3 }
 0x1c3   : > { %v581_v27 = vsub.f32 1.5, %v580_v12 }
 0x1c4   : > { %v2622_v25 = vpop.eup %1923  ;;  %v621_v14 = vsub.f32 1.5, %v620_v6  ;;  %v2624_v15 = vadd.f32 1e-05, %v479_v7  ;;  %v2626_v18 = vadd.f32 1e-05, %v475_v16  ;;  %769 = vmatmul.bf16.gmra.mxu0 %v676_v44 }
 0x1c5   : > { %v1926_v48 = vpop.eup %1925  ;;  %v648_v13 = vmul.f32 %v2622_v25, %v2595_v56  ;;  %v582_v40 = vmul.f32 %v2593_v55, %v581_v27  ;;  %vm654_vm6 = vweird.f32 %v2622_v25 }
 0x1c6   : > { %v588_v53 = vmul.f32 %v1926_v48, %v2597_v58  ;;  %1927 = vrsqrt.f32 %v2624_v15  ;;  %v622_v26 = vmul.f32 %v1922_v24, %v621_v14  ;;  %vm594_vm2 = vweird.f32 %v1926_v48  ;;  %vm2675_vm8 = vmor %vm653_vm4, %vm654_vm6 }
 0x1c7   : > { %v649_v29 = vmul.f32 %v2622_v25, %v648_v13  ;;  %1929 = vrsqrt.f32 %v2626_v18  ;;  %v755_v31 = vpop.f32.mrf.mxu0  ;;  %v586_v54 = vsel %vm2654_vm3, %v2593_v55, %v582_v40  ;;  %vm595_vm5 = vmor %vm593_vm1, %vm594_vm2  ;;  %vm643_vm9 = vweird.f32 %v2624_v15 }
 0x1c8   : > { %v589_v28 = vmul.f32 %v1926_v48, %v588_v53  ;;  %v2639_v33 = vadd.f32 %v2620_v57, %v755_v31  ;;  %v626_v20 = vsel %vm625_vm14, %v1922_v24, %v622_v26  ;;  %v665_v55 = vmul.f32 %v586_v54, %v2494_v35 }
 0x1c9   : > { %v650_v32 = vmul.f32 0.5, %v649_v29  ;;  %v456_v38 = vpop.xlane.xlu1 %455  ;;  %v669_v34 = vmul.f32 %v626_v20, %v2500_v42  ;;  %vm603_vm11 = vweird.f32 %v2626_v18 }
 0x1ca   : > { %v590_v39 = vmul.f32 0.5, %v589_v28  ;;  %v795_v22 = vmax.f32 %v2639_v33, 0.0  ;;  %v476_v9 = vmul.f32 %v456_v38, %v2411_v23 }
 0x1cb   : > { %v679_v61 = vpack.c.bf16 %v670_v50, %v669_v34  ;;  %v651_v52 = vsub.f32 1.5, %v650_v32 }
 0x1cc   : > { %v1928_v46 = vpop.eup %1927  ;;  %v591_v17 = vsub.f32 1.5, %v590_v39  ;;  %v492_v49 = vadd.f32 1e-05, %v476_v9  ;;  %811 = vadd.xlane.f32.xlu2 %v795_v22 }
 0x1cd   : > { %v2650_v51 = vpop.eup %1929  ;;  %v638_v42 = vmul.f32 %v1928_v46, %v2624_v15  ;;  %784 = vmatmul.bf16.vlgmr.msra.gmra.mxu3 %v679_v61  ;;  %v652_v0 = vmul.f32 %v2622_v25, %v651_v52  ;;  %vm644_vm7 = vweird.f32 %v1928_v46 }
 0x1ce   : > { %v598_v41 = vmul.f32 %v2650_v51, %v2626_v18  ;;  %1931 = vrsqrt.f32 %v492_v49  ;;  %v592_v59 = vmul.f32 %v1926_v48, %v591_v17  ;;  %vm645_vm10 = vmor %vm643_vm9, %vm644_vm7  ;;  %vm604_vm12 = vweird.f32 %v2650_v51 }
 0x1cf   : > { %v639_v45 = vmul.f32 %v1928_v46, %v638_v42  ;;  %v757_v24 = vpop.f32.mrf.mxu0  ;;  %vm605_vm13 = vmor %vm603_vm11, %vm604_vm12  ;;  %vm613_vm14 = vweird.f32 %v492_v49 }
 0x1d0   : > { %v599_v58 = vmul.f32 %v2650_v51, %v598_v41  ;;  %v2666_v60 = vadd.f32 %v2620_v57, %v757_v24  ;;  %v596_v63 = vsel %vm595_vm5, %v1926_v48, %v592_v59 }
 0x1d1   : > { %v640_v62 = vmul.f32 0.5, %v639_v45  ;;  %v666_v3 = vmul.f32 %v596_v63, %v2524_v2  ;;  %v656_v2 = vsel %vm2675_vm8, %v2622_v25, %v652_v0 }
 0x1d2   : > { %v600_v1 = vmul.f32 0.5, %v599_v58  ;;  %v796_v21 = vmax.f32 %v2666_v60, 0.0  ;;  %v672_v14 = vmul.f32 %v656_v2, %v2512_v11 }
 0x1d3   : > { %v641_v4 = vsub.f32 1.5, %v640_v62  ;;  %v677_v5 = vpack.c.bf16 %v666_v3, %v665_v55 }
 0x1d4   : > { %v1932_v37 = vpop.eup %1931  ;;  %813 = vadd.xlane.f32.xlu0 %v796_v21  ;;  %v601_v6 = vsub.f32 1.5, %v600_v1 }
 0x1d5   : > { %v608_v7 = vmul.f32 %v1932_v37, %v492_v49  ;;  %v642_v35 = vmul.f32 %v1928_v46, %v641_v4  ;;  %774 = vmatmul.bf16.gmra.mxu0 %v677_v5  ;;  %vm614_vm15 = vweird.f32 %v1932_v37 }
 0x1d6   : > { %v602_v48 = vmul.f32 %v2650_v51, %v601_v6  ;;  %vm615_vm0 = vmor %vm613_vm14, %vm614_vm15 }
 0x1d7   : > { %v609_v56 = vmul.f32 %v1932_v37, %v608_v7  ;;  %v760_v16 = vpop.f32.mrf.mxu0  ;;  %v646_v44 = vsel %vm645_vm10, %v1928_v46, %v642_v35 }
 0x1d8   : > { %v761_v8 = vadd.f32 %v2620_v57, %v760_v16  ;;  %v671_v12 = vmul.f32 %v646_v44, %v2546_v30  ;;  %v606_v18 = vsel %vm605_vm13, %v2650_v51, %v602_v48 }
 0x1d9   : > { %v610_v15 = vmul.f32 0.5, %v609_v56  ;;  %v667_v11 = vmul.f32 %v606_v18, %v2538_v10 }
 0x1da   : > { %v797_v25 = vmax.f32 %v761_v8, 0.0  ;;  %v680_v13 = vpack.c.bf16 %v672_v14, %v671_v12 }
 0x1db   : > { %v611_v53 = vsub.f32 1.5, %v610_v15 }
 0x1dc   : > { %815 = vadd.xlane.f32.xlu1 %v797_v25 }
 0x1dd   : > { %v612_v19 = vmul.f32 %v1932_v37, %v611_v53  ;;  %789 = vmatmul.bf16.gmra.mxu3 %v680_v13 }
 0x1df   : > { %v762_v27 = vpop.f32.mrf.mxu0  ;;  %v616_v29 = vsel %vm615_vm0, %v1932_v37, %v612_v19 }
 0x1e0   : > { %v763_v30 = vadd.f32 %v2620_v57, %v762_v27  ;;  %v668_v31 = vmul.f32 %v616_v29, %v2559_v47 }
 0x1e2   : > { %v798_v26 = vmax.f32 %v763_v30, 0.0  ;;  %v678_v28 = vpack.c.bf16 %v668_v31, %v667_v11 }
 0x1e4   : > { %817 = vadd.xlane.f32.xlu2 %v798_v26 }
 0x1e5   : > { %779 = vmatmul.bf16.gmra.mxu0 %v678_v28  ;;  %v1683_v28 = vld [vmem:[#allocation7 + $0x30] sm:$0xff] }
 0x1e7   : > { %v765_v32 = vpop.f32.mrf.mxu0 }
 0x1e8   : > { %v766_v38 = vadd.f32 %v2620_v57, %v765_v32  ;;  %v1682_v32 = vld [vmem:[#allocation7 + $0x28] sm:$0xff] }
 0x1ea   : > { %v799_v20 = vmax.f32 %v766_v38, 0.0  ;;  %v1681_v38 = vld [vmem:[#allocation7 + $0x20] sm:$0xff] }
 0x1ec   : > { %819 = vadd.xlane.f32.xlu0 %v799_v20 }
 0x1ef   : > { %v767_v50 = vpop.f32.mrf.mxu0 }
 0x1f0   : > { %v768_v39 = vadd.f32 %v2620_v57, %v767_v50  ;;  %v1678_v50 = vld [vmem:[#allocation7 + $0x8] sm:$0xff] }
 0x1f2   : > { %v800_v9 = vmax.f32 %v768_v39, 0.0 }
 0x1f4   : > { %821 = vadd.xlane.f32.xlu1 %v800_v9 }
 0x23f   : > { %v812_v34 = vpop.xlane.xlu2 %811 }
 0x240   : > { %v843_v40 = vmul.f32 %v812_v34, %v2411_v23  ;;  %v1677_v34 = vld [vmem:[#allocation7] sm:$0xff] }
 0x241   : > { %v770_v10 = vpop.f32.mrf.mxu0 }
 0x242   : > { %v2700_v47 = vsub.f32 %v795_v22, %v843_v40  ;;  %v2703_v46 = vadd.f32 %v2620_v57, %v770_v10 }
 0x244   : > { %v801_v17 = vmax.f32 %v2703_v46, 0.0  ;;  %v875_v49 = vmul.f32 %v2700_v47, %v2700_v47 }
 0x246   : > { %891 = vadd.xlane.f32.xlu2 %v875_v49  ;;  %823 = vadd.xlane.f32.xlu1 %v801_v17 }
 0x247   : > { %v814_v61 = vpop.xlane.xlu0 %813 }
 0x248   : > { %v844_v51 = vmul.f32 %v814_v61, %v2411_v23 }
 0x249   : > { %v772_v52 = vpop.f32.mrf.mxu0 }
 0x24a   : > { %v2713_v33 = vsub.f32 %v796_v21, %v844_v51  ;;  %v2716_v22 = vadd.f32 %v2620_v57, %v772_v52 }
 0x24c   : > { %v802_v42 = vmax.f32 %v2716_v22, 0.0  ;;  %v876_v36 = vmul.f32 %v2713_v33, %v2713_v33 }
 0x24e   : > { %825 = vadd.xlane.f32.xlu2 %v802_v42  ;;  %893 = vadd.xlane.f32.xlu0 %v876_v36 }
 0x24f   : > { %v816_v41 = vpop.xlane.xlu1 %815 }
 0x250   : > { %v845_v45 = vmul.f32 %v816_v41, %v2411_v23  ;;  %v785_v24 = vpop.f32.mrf.mxu3 }
 0x251   : > { %v2727_v59 = vadd.f32 %v2620_v57, %v785_v24 }
 0x252   : > { %v2724_v54 = vsub.f32 %v797_v25, %v845_v45  ;;  %v775_v58 = vpop.f32.mrf.mxu0 }
 0x253   : > { %v807_v60 = vmax.f32 %v2727_v59, 0.0  ;;  %v2750_v7 = vadd.f32 %v2620_v57, %v775_v58 }
 0x254   : > { %v877_v62 = vmul.f32 %v2724_v54, %v2724_v54 }
 0x255   : > { %v803_v8 = vmax.f32 %v2750_v7, 0.0 }
 0x256   : > { %895 = vadd.xlane.f32.xlu2 %v877_v62  ;;  %835 = vadd.xlane.f32.xlu0 %v807_v60 }
 0x257   : > { %v818_v63 = vpop.xlane.xlu2 %817 }
 0x258   : > { %v846_v0 = vmul.f32 %v818_v63, %v2411_v23  ;;  %v787_v1 = vpop.f32.mrf.mxu3 }
 0x259   : > { %v2738_v55 = vadd.f32 %v2620_v57, %v787_v1 }
 0x25a   : > { %v2735_v21 = vsub.f32 %v798_v26, %v846_v0  ;;  %v777_v3 = vpop.f32.mrf.mxu0  ;;  %v1684_v26 = vld [vmem:[#allocation7 + $0x38] sm:$0xff] }
 0x25b   : > { %v808_v4 = vmax.f32 %v2738_v55, 0.0  ;;  %v2742_v37 = vadd.f32 %v2620_v57, %v777_v3  ;;  %1204 = vmatpush.bf16.msra.mxu1 %v1684_v26  ;;  %1788 = vmatpush.bf16.msrb.mxu3 %v1684_v26 }
 0x25c   : > { %v878_v43 = vmul.f32 %v2735_v21, %v2735_v21 }
 0x25d   : > { %v804_v5 = vmax.f32 %v2742_v37, 0.0  ;;  %837 = vadd.xlane.f32.xlu1 %v808_v4 }
 0x25e   : > { %897 = vadd.xlane.f32.xlu0 %v878_v43 }
 0x25f   : > { %v820_v6 = vpop.xlane.xlu0 %819  ;;  %829 = vadd.xlane.f32.xlu2 %v804_v5  ;;  %1205 = vmatpush.bf16.msra.mxu1 %v1683_v28 }
 0x260   : > { %v847_v35 = vmul.f32 %v820_v6, %v2411_v23  ;;  %v790_v2 = vpop.f32.mrf.mxu3  ;;  %1789 = vmatpush.bf16.msrb.mxu3 %v1683_v28 }
 0x261   : > { %v2756_v56 = vadd.f32 %v2620_v57, %v790_v2 }
 0x262   : > { %v2758_v16 = vsub.f32 %v799_v20, %v847_v35  ;;  %v780_v44 = vpop.f32.mrf.mxu0  ;;  %v1679_v20 = vld [vmem:[#allocation7 + $0x10] sm:$0xff] }
 0x263   : > { %v809_v12 = vmax.f32 %v2756_v56, 0.0  ;;  %v2784_v11 = vadd.f32 %v2620_v57, %v780_v44  ;;  %1206 = vmatpush.bf16.msra.mxu1 %v1682_v32 }
 0x264   : > { %v879_v14 = vmul.f32 %v2758_v16, %v2758_v16  ;;  %1790 = vmatpush.bf16.msrb.mxu3 %v1682_v32 }
 0x265   : > { %827 = vadd.xlane.f32.xlu1 %v803_v8  ;;  %v805_v31 = vmax.f32 %v2784_v11, 0.0 }
 0x266   : > { %839 = vadd.xlane.f32.xlu0 %v809_v12 }
 0x267   : > { %v822_v15 = vpop.xlane.xlu1 %821  ;;  %899 = vadd.xlane.f32.xlu2 %v879_v14  ;;  %1207 = vmatpush.bf16.msra.mxu1 %v1681_v38 }
 0x268   : > { %v848_v48 = vmul.f32 %v822_v15, %v2411_v23  ;;  %v792_v25 = vpop.f32.mrf.mxu3  ;;  %1791 = vmatpush.bf16.msrb.mxu3 %v1681_v38 }
 0x269   : > { %v2772_v53 = vadd.f32 %v2620_v57, %v792_v25 }
 0x26a   : > { %v2769_v13 = vsub.f32 %v800_v9, %v848_v48  ;;  %v782_v18 = vpop.f32.mrf.mxu0 }
 0x26b   : > { %v810_v19 = vmax.f32 %v2772_v53, 0.0  ;;  %v2776_v27 = vadd.f32 %v2620_v57, %v782_v18  ;;  %v1680_v57 = vld [vmem:[#allocation7 + $0x18] sm:$0xff] }
 0x26c   : > { %v880_v29 = vmul.f32 %v2769_v13, %v2769_v13  ;;  %1208 = vmatpush.bf16.msra.mxu1 %v1680_v57  ;;  %1792 = vmatpush.bf16.msrb.mxu3 %v1680_v57 }
 0x26d   : > { %v806_v30 = vmax.f32 %v2776_v27, 0.0  ;;  %841 = vadd.xlane.f32.xlu1 %v810_v19 }
 0x26e   : > { %901 = vadd.xlane.f32.xlu0 %v880_v29 }
 0x26f   : > { %833 = vadd.xlane.f32.xlu2 %v806_v30 }
 0x270   : > { %1209 = vmatpush.bf16.msra.mxu1 %v1679_v20  ;;  %1793 = vmatpush.bf16.msrb.mxu3 %v1679_v20 }
 0x274   : > { %1210 = vmatpush.bf16.msra.mxu1 %v1678_v50  ;;  %1794 = vmatpush.bf16.msrb.mxu3 %v1678_v50 }
 0x275   : > { %831 = vadd.xlane.f32.xlu1 %v805_v31 }
 0x278   : > { %1211 = vmatpush.bf16.msra.mxu1 %v1677_v34  ;;  %1795 = vmatpush.bf16.msrb.mxu3 %v1677_v34 }
 0x2b9   : > { %v892_v39 = vpop.xlane.xlu2 %891  ;;  %v824_v9 = vpop.xlane.xlu1 %823 }
 0x2ba   : > { %v923_v40 = vmul.f32 %v892_v39, %v2411_v23  ;;  %v849_v10 = vmul.f32 %v824_v9, %v2411_v23 }
 0x2bc   : > { %v939_v49 = vadd.f32 1e-05, %v923_v40  ;;  %v2795_v61 = vsub.f32 %v801_v17, %v849_v10 }
 0x2be   : > { %1933 = vrsqrt.f32 %v939_v49  ;;  %v881_v51 = vmul.f32 %v2795_v61, %v2795_v61  ;;  %vm961_vm2 = vweird.f32 %v939_v49 }
 0x2c0   : > { %903 = vadd.xlane.f32.xlu0 %v881_v51 }
 0x2c1   : > { %v826_v52 = vpop.xlane.xlu2 %825  ;;  %v894_v36 = vpop.xlane.xlu0 %893 }
 0x2c2   : > { %v850_v41 = vmul.f32 %v826_v52, %v2411_v23  ;;  %v924_v45 = vmul.f32 %v894_v36, %v2411_v23 }
 0x2c4   : > { %v1934_v24 = vpop.eup %1933  ;;  %v2803_v58 = vsub.f32 %v802_v42, %v850_v41  ;;  %v940_v62 = vadd.f32 1e-05, %v924_v45 }
 0x2c5   : > { %v956_v46 = vmul.f32 %v1934_v24, %v939_v49  ;;  %vm962_vm1 = vweird.f32 %v1934_v24 }
 0x2c6   : > { %1935 = vrsqrt.f32 %v940_v62  ;;  %v882_v17 = vmul.f32 %v2803_v58, %v2803_v58  ;;  %vm2822_vm4 = vmor %vm961_vm2, %vm962_vm1  ;;  %vm971_vm5 = vweird.f32 %v940_v62 }
 0x2c7   : > { %v957_v63 = vmul.f32 %v1934_v24, %v956_v46 }
 0x2c8   : > { %905 = vadd.xlane.f32.xlu1 %v882_v17 }
 0x2c9   : > { %v958_v0 = vmul.f32 0.5, %v957_v63  ;;  %v896_v1 = vpop.xlane.xlu2 %895  ;;  %v836_v3 = vpop.xlane.xlu0 %835 }
 0x2ca   : > { %v925_v43 = vmul.f32 %v896_v1, %v2411_v23  ;;  %v855_v6 = vmul.f32 %v836_v3, %v2411_v23 }
 0x2cb   : > { %v959_v42 = vsub.f32 1.5, %v958_v0 }
 0x2cc   : > { %v1936_v35 = vpop.eup %1935  ;;  %v2809_v2 = vadd.f32 1e-05, %v925_v43  ;;  %v2813_v22 = vsub.f32 %v807_v60, %v855_v6 }
 0x2cd   : > { %v966_v44 = vmul.f32 %v1936_v35, %v940_v62  ;;  %v960_v29 = vmul.f32 %v1934_v24, %v959_v42  ;;  %vm972_vm3 = vweird.f32 %v1936_v35 }
 0x2ce   : > { %1937 = vrsqrt.f32 %v2809_v2  ;;  %v887_v14 = vmul.f32 %v2813_v22, %v2813_v22  ;;  %vm973_vm6 = vmor %vm971_vm5, %vm972_vm3  ;;  %vm981_vm8 = vweird.f32 %v2809_v2 }
 0x2cf   : > { %v967_v15 = vmul.f32 %v1936_v35, %v966_v44  ;;  %v964_v9 = vsel %vm2822_vm4, %v1934_v24, %v960_v29 }
 0x2d0   : > { %915 = vadd.xlane.f32.xlu2 %v887_v14  ;;  %v838_v25 = vpop.xlane.xlu1 %837  ;;  %v1115_v51 = vmul.f32 %v964_v9, %v2700_v47 }
 0x2d1   : > { %v968_v48 = vmul.f32 0.5, %v967_v15  ;;  %v898_v18 = vpop.xlane.xlu0 %897  ;;  %v856_v26 = vmul.f32 %v838_v25, %v2411_v23 }
 0x2d2   : > { %v926_v59 = vmul.f32 %v898_v18, %v2411_v23  ;;  %v830_v28 = vpop.xlane.xlu2 %829 }
 0x2d3   : > { %v969_v60 = vsub.f32 1.5, %v968_v48  ;;  %v2828_v57 = vsub.f32 %v808_v4, %v856_v26  ;;  %v852_v20 = vmul.f32 %v830_v28, %v2411_v23 }
 0x2d4   : > { %v2820_v32 = vpop.eup %1937  ;;  %v942_v50 = vadd.f32 1e-05, %v926_v59 }
 0x2d5   : > { %v976_v39 = vmul.f32 %v2820_v32, %v2809_v2  ;;  %v970_v34 = vmul.f32 %v1936_v35, %v969_v60  ;;  %v2837_v40 = vsub.f32 %v804_v5, %v852_v20  ;;  %v888_v55 = vmul.f32 %v2828_v57, %v2828_v57 }
 0x2d6   : > { %1939 = vrsqrt.f32 %v942_v50  ;;  %vm982_vm7 = vweird.f32 %v2820_v32  ;;  %vm991_vm11 = vweird.f32 %v942_v50 }
 0x2d7   : > { %v977_v4 = vmul.f32 %v2820_v32, %v976_v39  ;;  %v974_v10 = vsel %vm973_vm6, %v1936_v35, %v970_v34  ;;  %917 = vadd.xlane.f32.xlu0 %v888_v55  ;;  %v884_v49 = vmul.f32 %v2837_v40, %v2837_v40  ;;  %vm2866_vm10 = vmor %vm981_vm8, %vm982_vm7 }
 0x2d8   : > { %v1116_v52 = vmul.f32 %v974_v10, %v2713_v33  ;;  %v828_v41 = vpop.xlane.xlu1 %827 }
 0x2d9   : > { %v978_v36 = vmul.f32 0.5, %v977_v4  ;;  %v840_v37 = vpop.xlane.xlu0 %839  ;;  %v851_v5 = vmul.f32 %v828_v41, %v2411_v23  ;;  %909 = vadd.xlane.f32.xlu2 %v884_v49 }
 0x2da   : > { %v857_v45 = vmul.f32 %v840_v37, %v2411_v23  ;;  %v1131_v24 = vpack.c.bf16 %v1116_v52, %v1115_v51  ;;  %v900_v62 = vpop.xlane.xlu2 %899 }
 0x2db   : > { %v2850_v17 = vsub.f32 %v803_v8, %v851_v5  ;;  %v927_v63 = vmul.f32 %v900_v62, %v2411_v23  ;;  %v979_v33 = vsub.f32 1.5, %v978_v36  ;;  %v1692_v5 = vld [vmem:[#allocation8 + $0x38] sm:$0xff] }
 0x2dc   : > { %v1940_v46 = vpop.eup %1939  ;;  %v2855_v47 = vsub.f32 %v809_v12, %v857_v45  ;;  %1212 = vmatmul.bf16.vlgmr.msra.gmra.mxu1 %v1131_v24  ;;  %1342 = vmatpush.bf16.msra.mxu2 %v1692_v5  ;;  %v1691_v45 = vld [vmem:[#allocation8 + $0x30] sm:$0xff]  ;;  %v1690_v24 = vld [vmem:[#allocation8 + $0x28] sm:$0xff] }
 0x2dd   : > { %v986_v0 = vmul.f32 %v1940_v46, %v942_v50  ;;  %v943_v1 = vadd.f32 1e-05, %v927_v63  ;;  %v883_v3 = vmul.f32 %v2850_v17, %v2850_v17  ;;  %v980_v12 = vmul.f32 %v2820_v32, %v979_v33  ;;  %1796 = vmatpush.bf16.msra.mxu3 %v1692_v5  ;;  %v1689_v63 = vld [vmem:[#allocation8 + $0x20] sm:$0xff] }
 0x2de   : > { %v889_v43 = vmul.f32 %v2855_v47, %v2855_v47  ;;  %vm992_vm9 = vweird.f32 %v1940_v46 }
 0x2df   : > { %v987_v6 = vmul.f32 %v1940_v46, %v986_v0  ;;  %1941 = vrsqrt.f32 %v943_v1  ;;  %907 = vadd.xlane.f32.xlu1 %v883_v3  ;;  %v984_v29 = vsel %vm2866_vm10, %v2820_v32, %v980_v12  ;;  %vm993_vm12 = vmor %vm991_vm11, %vm992_vm9  ;;  %vm1001_vm14 = vweird.f32 %v943_v1 }
 0x2e0   : > { %919 = vadd.xlane.f32.xlu0 %v889_v43  ;;  %v842_v56 = vpop.xlane.xlu1 %841  ;;  %v1117_v38 = vmul.f32 %v984_v29, %v2724_v54  ;;  %1343 = vmatpush.bf16.msra.mxu2 %v1691_v45  ;;  %v1687_v43 = vld [vmem:[#allocation8 + $0x10] sm:$0xff] }
 0x2e1   : > { %v988_v7 = vmul.f32 0.5, %v987_v6  ;;  %v902_v8 = vpop.xlane.xlu0 %901  ;;  %v858_v35 = vmul.f32 %v842_v56, %v2411_v23  ;;  %1797 = vmatpush.bf16.msra.mxu3 %v1691_v45  ;;  %v1686_v56 = vld [vmem:[#allocation8 + $0x8] sm:$0xff] }
 0x2e2   : > { %v928_v42 = vmul.f32 %v902_v8, %v2411_v23  ;;  %v834_v14 = vpop.xlane.xlu2 %833 }
 0x2e3   : > { %v989_v44 = vsub.f32 1.5, %v988_v7  ;;  %v2872_v48 = vsub.f32 %v810_v19, %v858_v35  ;;  %v854_v25 = vmul.f32 %v834_v14, %v2411_v23  ;;  %v1685_v14 = vld [vmem:[#allocation8] sm:$0xff] }
 0x2e4   : > { %v944_v18 = vadd.f32 1e-05, %v928_v42  ;;  %1344 = vmatpush.bf16.msra.mxu2 %v1690_v24 }
 0x2e5   : > { %v990_v2 = vmul.f32 %v1940_v46, %v989_v44  ;;  %v1942_v26 = vpop.eup %1941  ;;  %v2880_v59 = vsub.f32 %v806_v30, %v854_v25  ;;  %v890_v53 = vmul.f32 %v2872_v48, %v2872_v48  ;;  %1798 = vmatpush.bf16.msra.mxu3 %v1690_v24  ;;  %v2927_v24 = vld [vmem:[#allocation10 + $0x1] ss:$0 sm:$0xff] }
 0x2e6   : > { %1943 = vrsqrt.f32 %v944_v18  ;;  %v996_v19 = vmul.f32 %v1942_v26, %v943_v1  ;;  %vm1002_vm13 = vweird.f32 %v1942_v26  ;;  %vm1011_vm1 = vweird.f32 %v944_v18 }
 0x2e7   : > { %v994_v60 = vsel %vm993_vm12, %v1940_v46, %v990_v2  ;;  %921 = vadd.xlane.f32.xlu1 %v890_v53  ;;  %v886_v28 = vmul.f32 %v2880_v59, %v2880_v59  ;;  %vm1003_vm0 = vmor %vm1001_vm14, %vm1002_vm13 }
 0x2e8   : > { %v1118_v32 = vmul.f32 %v994_v60, %v2735_v21  ;;  %v997_v20 = vmul.f32 %v1942_v26, %v996_v19  ;;  %v832_v50 = vpop.xlane.xlu1 %831  ;;  %1345 = vmatpush.bf16.msra.mxu2 %v1689_v63 }
 0x2e9   : > { %v853_v27 = vmul.f32 %v832_v50, %v2411_v23  ;;  %913 = vadd.xlane.f32.xlu0 %v886_v28  ;;  %1799 = vmatpush.bf16.msra.mxu3 %v1689_v63 }
 0x2ea   : > { %v1132_v30 = vpack.c.bf16 %v1118_v32, %v1117_v38  ;;  %v998_v39 = vmul.f32 0.5, %v997_v20 }
 0x2eb   : > { %v2891_v34 = vsub.f32 %v805_v31, %v853_v27 }
 0x2ec   : > { %v1944_v9 = vpop.eup %1943  ;;  %1217 = vmatmul.bf16.gmra.mxu1 %v1132_v30  ;;  %v999_v55 = vsub.f32 1.5, %v998_v39 }
 0x2ed   : > { %v1006_v4 = vmul.f32 %v1944_v9, %v944_v18  ;;  %v885_v54 = vmul.f32 %v2891_v34, %v2891_v34  ;;  %vm1012_vm15 = vweird.f32 %v1944_v9 }
 0x2ee   : > { %v1000_v49 = vmul.f32 %v1942_v26, %v999_v55  ;;  %vm1013_vm2 = vmor %vm1011_vm1, %vm1012_vm15 }
 0x2ef   : > { %v1007_v10 = vmul.f32 %v1944_v9, %v1006_v4  ;;  %911 = vadd.xlane.f32.xlu2 %v885_v54 }
 0x2f0   : > { %v1004_v52 = vsel %vm1003_vm0, %v1942_v26, %v1000_v49 }
 0x2f1   : > { %v1008_v21 = vmul.f32 0.5, %v1007_v10  ;;  %v1119_v36 = vmul.f32 %v1004_v52, %v2758_v16  ;;  %v1688_v16 = vld [vmem:[#allocation8 + $0x18] sm:$0xff] }
 0x2f2   : > { %1346 = vmatpush.bf16.msra.mxu2 %v1688_v16  ;;  %1800 = vmatpush.bf16.msra.mxu3 %v1688_v16 }
 0x2f3   : > { %v1009_v51 = vsub.f32 1.5, %v1008_v21 }
 0x2f5   : > { %v1010_v11 = vmul.f32 %v1944_v9, %v1009_v51 }
 0x2f6   : > { %1347 = vmatpush.bf16.msra.mxu2 %v1687_v43  ;;  %1801 = vmatpush.bf16.msra.mxu3 %v1687_v43 }
 0x2f7   : > { %v1014_v31 = vsel %vm1013_vm2, %v1944_v9, %v1010_v11 }
 0x2f8   : > { %v1120_v41 = vmul.f32 %v1014_v31, %v2769_v13 }
 0x2fa   : > { %v1133_v37 = vpack.c.bf16 %v1120_v41, %v1119_v36  ;;  %1348 = vmatpush.bf16.msra.mxu2 %v1686_v56  ;;  %1802 = vmatpush.bf16.msra.mxu3 %v1686_v56 }
 0x2fc   : > { %1222 = vmatmul.bf16.gmra.mxu1 %v1133_v37 }
 0x2fe   : > { %1349 = vmatpush.bf16.msra.mxu2 %v1685_v14  ;;  %1803 = vmatpush.bf16.msra.mxu3 %v1685_v14 }
 0x333   : > { %v904_v62 = vpop.xlane.xlu0 %903 }
 0x334   : > { %v929_v46 = vmul.f32 %v904_v62, %v2411_v23 }
 0x336   : > { %v945_v33 = vadd.f32 1e-05, %v929_v46 }
 0x338   : > { %1945 = vrsqrt.f32 %v945_v33  ;;  %vm1021_vm4 = vweird.f32 %v945_v33 }
 0x33b   : > { %v906_v13 = vpop.xlane.xlu1 %905 }
 0x33c   : > { %v930_v0 = vmul.f32 %v906_v13, %v2411_v23 }
 0x33e   : > { %v1946_v1 = vpop.eup %1945  ;;  %v946_v3 = vadd.f32 1e-05, %v930_v0 }
 0x33f   : > { %v1016_v6 = vmul.f32 %v1946_v1, %v945_v33  ;;  %vm1022_vm3 = vweird.f32 %v1946_v1 }
 0x340   : > { %1947 = vrsqrt.f32 %v946_v3  ;;  %vm1023_vm6 = vmor %vm1021_vm4, %vm1022_vm3  ;;  %vm1031_vm7 = vweird.f32 %v946_v3 }
 0x341   : > { %v1017_v7 = vmul.f32 %v1946_v1, %v1016_v6 }
 0x343   : > { %v1018_v8 = vmul.f32 0.5, %v1017_v7  ;;  %v916_v12 = vpop.xlane.xlu2 %915 }
 0x344   : > { %v935_v35 = vmul.f32 %v916_v12, %v2411_v23 }
 0x345   : > { %v1019_v15 = vsub.f32 1.5, %v1018_v8 }
 0x346   : > { %v1948_v42 = vpop.eup %1947  ;;  %v2900_v44 = vadd.f32 1e-05, %v935_v35 }
 0x347   : > { %v1026_v25 = vmul.f32 %v1948_v42, %v946_v3  ;;  %v1020_v26 = vmul.f32 %v1946_v1, %v1019_v15  ;;  %vm1032_vm5 = vweird.f32 %v1948_v42 }
 0x348   : > { %1949 = vrsqrt.f32 %v2900_v44  ;;  %vm1033_vm8 = vmor %vm1031_vm7, %vm1032_vm5  ;;  %vm1081_vm10 = vweird.f32 %v2900_v44 }
 0x349   : > { %v1027_v18 = vmul.f32 %v1948_v42, %v1026_v25  ;;  %v1024_v50 = vsel %vm1023_vm6, %v1946_v1, %v1020_v26 }
 0x34a   : > { %v918_v2 = vpop.xlane.xlu0 %917  ;;  %v1121_v55 = vmul.f32 %v1024_v50, %v2795_v61 }
 0x34b   : > { %v1028_v29 = vmul.f32 0.5, %v1027_v18  ;;  %v936_v53 = vmul.f32 %v918_v2, %v2411_v23 }
 0x34c   : > { %v910_v60 = vpop.xlane.xlu2 %909 }
 0x34d   : > { %v1029_v19 = vsub.f32 1.5, %v1028_v29  ;;  %v952_v38 = vadd.f32 1e-05, %v936_v53  ;;  %v932_v32 = vmul.f32 %v910_v60, %v2411_v23 }
 0x34e   : > { %v2904_v28 = vpop.eup %1949 }
 0x34f   : > { %v1076_v20 = vmul.f32 %v2904_v28, %v2900_v44  ;;  %v1030_v27 = vmul.f32 %v1948_v42, %v1029_v19  ;;  %1951 = vrsqrt.f32 %v952_v38  ;;  %v2909_v30 = vadd.f32 1e-05, %v932_v32 }
 0x350   : > { %vm1082_vm9 = vweird.f32 %v2904_v28  ;;  %vm1091_vm13 = vweird.f32 %v952_v38 }
 0x351   : > { %v1077_v39 = vmul.f32 %v2904_v28, %v1076_v20  ;;  %v1034_v9 = vsel %vm1033_vm8, %v1948_v42, %v1030_v27  ;;  %1953 = vrsqrt.f32 %v2909_v30  ;;  %vm2934_vm12 = vmor %vm1081_vm10, %vm1082_vm9  ;;  %vm1051_vm0 = vweird.f32 %v2909_v30 }
 0x352   : > { %v1122_v4 = vmul.f32 %v1034_v9, %v2803_v58  ;;  %v908_v10 = vpop.xlane.xlu1 %907 }
 0x353   : > { %v1078_v54 = vmul.f32 0.5, %v1077_v39  ;;  %v920_v21 = vpop.xlane.xlu0 %919  ;;  %v931_v49 = vmul.f32 %v908_v10, %v2411_v23 }
 0x354   : > { %v937_v51 = vmul.f32 %v920_v21, %v2411_v23  ;;  %v1134_v52 = vpack.c.bf16 %v1122_v4, %v1121_v55 }
 0x355   : > { %v1952_v11 = vpop.eup %1951  ;;  %v2917_v31 = vadd.f32 1e-05, %v931_v49  ;;  %v1079_v41 = vsub.f32 1.5, %v1078_v54 }
 0x356   : > { %v2919_v36 = vadd.f32 1e-05, %v937_v51  ;;  %1227 = vmatmul.bf16.gmra.mxu1 %v1134_v52  ;;  %v1086_v37 = vmul.f32 %v1952_v11, %v952_v38  ;;  %vm1092_vm11 = vweird.f32 %v1952_v11 }
 0x357   : > { %v2921_v5 = vpop.eup %1953  ;;  %1955 = vrsqrt.f32 %v2917_v31  ;;  %v1080_v62 = vmul.f32 %v2904_v28, %v1079_v41  ;;  %vm1093_vm14 = vmor %vm1091_vm13, %vm1092_vm11  ;;  %vm1041_vm3 = vweird.f32 %v2917_v31 }
 0x358   : > { %v1087_v61 = vmul.f32 %v1952_v11, %v1086_v37  ;;  %v1046_v58 = vmul.f32 %v2921_v5, %v2909_v30  ;;  %1957 = vrsqrt.f32 %v2919_v36  ;;  %vm1052_vm15 = vweird.f32 %v2921_v5 }
 0x359   : > { %v1213_v45 = vpop.f32.mrf.mxu1  ;;  %v1084_v44 = vsel %vm2934_vm12, %v2904_v28, %v1080_v62  ;;  %vm2964_vm2 = vmor %vm1051_vm0, %vm1052_vm15  ;;  %vm1101_vm6 = vweird.f32 %v2919_v36 }
 0x35a   : > { %v1088_v46 = vmul.f32 0.5, %v1087_v61  ;;  %v1047_v63 = vmul.f32 %v2921_v5, %v1046_v58  ;;  %v922_v33 = vpop.xlane.xlu1 %921  ;;  %v1214_v7 = vadd.f32 %v2927_v24, %v1213_v45  ;;  %v1127_v53 = vmul.f32 %v1084_v44, %v2813_v22  ;;  %v2993_v22 = vld [vmem:[#allocation10 + $0x2] ss:$0 sm:$0xff] }
 0x35b   : > { %v938_v16 = vmul.f32 %v922_v33, %v2411_v23 }
 0x35c   : > { %v1089_v13 = vsub.f32 1.5, %v1088_v46  ;;  %v1048_v0 = vmul.f32 0.5, %v1047_v63  ;;  %v914_v1 = vpop.xlane.xlu0 %913  ;;  %v1253_v28 = vmax.f32 %v1214_v7, 0.0 }
 0x35d   : > { %v1956_v3 = vpop.eup %1955  ;;  %v2938_v6 = vadd.f32 1e-05, %v938_v16  ;;  %v934_v56 = vmul.f32 %v914_v1, %v2411_v23 }
 0x35e   : > { %v2942_v8 = vpop.eup %1957  ;;  %v1090_v12 = vmul.f32 %v1952_v11, %v1089_v13  ;;  %v1049_v35 = vsub.f32 1.5, %v1048_v0  ;;  %v1036_v42 = vmul.f32 %v1956_v3, %v2917_v31  ;;  %vm1042_vm1 = vweird.f32 %v1956_v3 }
 0x35f   : > { %v1096_v14 = vmul.f32 %v2942_v8, %v2919_v36  ;;  %1959 = vrsqrt.f32 %v2938_v6  ;;  %v2952_v25 = vadd.f32 1e-05, %v934_v56  ;;  %vm1043_vm4 = vmor %vm1041_vm3, %vm1042_vm1  ;;  %vm1102_vm5 = vweird.f32 %v2942_v8 }
 0x360   : > { %v1037_v15 = vmul.f32 %v1956_v3, %v1036_v42  ;;  %v1094_v29 = vsel %vm1093_vm14, %v1952_v11, %v1090_v12  ;;  %v1050_v32 = vmul.f32 %v2921_v5, %v1049_v35  ;;  %vm1103_vm8 = vmor %vm1101_vm6, %vm1102_vm5  ;;  %vm1111_vm9 = vweird.f32 %v2938_v6 }
 0x361   : > { %v1215_v18 = vpop.f32.mrf.mxu1  ;;  %v1097_v2 = vmul.f32 %v2942_v8, %v1096_v14  ;;  %v1128_v19 = vmul.f32 %v1094_v29, %v2828_v57  ;;  %1961 = vrsqrt.f32 %v2952_v25  ;;  %vm1071_vm12 = vweird.f32 %v2952_v25 }
 0x362   : > { %v1216_v26 = vadd.f32 %v2927_v24, %v1215_v18  ;;  %v1038_v60 = vmul.f32 0.5, %v1037_v15  ;;  %v912_v38 = vpop.xlane.xlu2 %911  ;;  %v1054_v30 = vsel %vm2964_vm2, %v2921_v5, %v1050_v32 }
 0x363   : > { %v1098_v20 = vmul.f32 0.5, %v1097_v2  ;;  %v933_v27 = vmul.f32 %v912_v38, %v2411_v23  ;;  %v1137_v39 = vpack.c.bf16 %v1128_v19, %v1127_v53  ;;  %v1124_v41 = vmul.f32 %v1054_v30, %v2837_v40 }
 0x364   : > { %v1254_v50 = vmax.f32 %v1216_v26, 0.0  ;;  %v1039_v9 = vsub.f32 1.5, %v1038_v60 }
 0x365   : > { %v1960_v55 = vpop.eup %1959  ;;  %v949_v57 = vadd.f32 1e-05, %v933_v27  ;;  %1242 = vmatmul.bf16.vlgmr.msrb.gmra.mxu3 %v1137_v39  ;;  %v1099_v54 = vsub.f32 1.5, %v1098_v20 }
 0x366   : > { %v1269_v4 = vpack.c.bf16 %v1254_v50, %v1253_v28  ;;  %v1106_v23 = vmul.f32 %v1960_v55, %v2938_v6  ;;  %v1040_v10 = vmul.f32 %v1956_v3, %v1039_v9  ;;  %vm1112_vm7 = vweird.f32 %v1960_v55 }
 0x367   : > { %1963 = vrsqrt.f32 %v949_v57  ;;  %v1962_v21 = vpop.eup %1961  ;;  %v1100_v61 = vmul.f32 %v2942_v8, %v1099_v54  ;;  %vm1113_vm10 = vmor %vm1111_vm9, %vm1112_vm7  ;;  %vm1061_vm15 = vweird.f32 %v949_v57 }
 0x368   : > { %1350 = vmatmul.bf16.vlgmr.msra.gmra.mxu2 %v1269_v4  ;;  %v1107_v49 = vmul.f32 %v1960_v55, %v1106_v23  ;;  %v1044_v52 = vsel %vm1043_vm4, %v1956_v3, %v1040_v10  ;;  %v1066_v11 = vmul.f32 %v1962_v21, %v2952_v25  ;;  %vm1072_vm11 = vweird.f32 %v1962_v21 }
 0x369   : > { %v1218_v51 = vpop.f32.mrf.mxu1  ;;  %v1123_v31 = vmul.f32 %v1044_v52, %v2850_v17  ;;  %v1104_v40 = vsel %vm1103_vm8, %v2942_v8, %v1100_v61  ;;  %vm1073_vm14 = vmor %vm1071_vm12, %vm1072_vm11 }
 0x36a   : > { %v1108_v37 = vmul.f32 0.5, %v1107_v49  ;;  %v1067_v58 = vmul.f32 %v1962_v21, %v1066_v11  ;;  %v1219_v16 = vadd.f32 %v2927_v24, %v1218_v51  ;;  %v1129_v3 = vmul.f32 %v1104_v40, %v2855_v47 }
 0x36b   : > { %v1135_v5 = vpack.c.bf16 %v1124_v41, %v1123_v31 }
 0x36c   : > { %v1109_v45 = vsub.f32 1.5, %v1108_v37  ;;  %v1068_v46 = vmul.f32 0.5, %v1067_v58  ;;  %v1255_v56 = vmax.f32 %v1219_v16, 0.0 }
 0x36d   : > { %v1964_v62 = vpop.eup %1963  ;;  %1232 = vmatmul.bf16.gmra.mxu1 %v1135_v5 }
 0x36e   : > { %v1056_v17 = vmul.f32 %v1964_v62, %v949_v57  ;;  %v1110_v63 = vmul.f32 %v1960_v55, %v1109_v45  ;;  %v1069_v33 = vsub.f32 1.5, %v1068_v46  ;;  %vm1062_vm13 = vweird.f32 %v1964_v62 }
 0x36f   : > { %vm1063_vm0 = vmor %vm1061_vm15, %vm1062_vm13 }
 0x370   : > { %v1057_v13 = vmul.f32 %v1964_v62, %v1056_v17  ;;  %v1114_v1 = vsel %vm1113_vm10, %v1960_v55, %v1110_v63  ;;  %v1070_v6 = vmul.f32 %v1962_v21, %v1069_v33 }
 0x371   : > { %v1220_v0 = vpop.f32.mrf.mxu1  ;;  %v1130_v43 = vmul.f32 %v1114_v1, %v2872_v48 }
 0x372   : > { %v1221_v36 = vadd.f32 %v2927_v24, %v1220_v0  ;;  %v1058_v7 = vmul.f32 0.5, %v1057_v13  ;;  %v1074_v14 = vsel %vm1073_vm14, %v1962_v21, %v1070_v6 }
 0x373   : > { %v1138_v8 = vpack.c.bf16 %v1130_v43, %v1129_v3  ;;  %v1126_v18 = vmul.f32 %v1074_v14, %v2880_v59 }
 0x374   : > { %v1256_v12 = vmax.f32 %v1221_v36, 0.0  ;;  %v1059_v35 = vsub.f32 1.5, %v1058_v7 }
 0x375   : > { %1247 = vmatmul.bf16.gmra.mxu3 %v1138_v8 }
 0x376   : > { %v1270_v42 = vpack.c.bf16 %v1256_v12, %v1255_v56  ;;  %v1060_v44 = vmul.f32 %v1964_v62, %v1059_v35 }
 0x378   : > { %1355 = vmatmul.bf16.gmra.mxu2 %v1270_v42  ;;  %v1064_v48 = vsel %vm1063_vm0, %v1964_v62, %v1060_v44 }
 0x379   : > { %v1223_v47 = vpop.f32.mrf.mxu1  ;;  %v1125_v15 = vmul.f32 %v1064_v48, %v2891_v34 }
 0x37a   : > { %v1224_v25 = vadd.f32 %v2927_v24, %v1223_v47 }
 0x37b   : > { %v1136_v29 = vpack.c.bf16 %v1126_v18, %v1125_v15 }
 0x37c   : > { %v1257_v53 = vmax.f32 %v1224_v25, 0.0 }
 0x37d   : > { %1237 = vmatmul.bf16.gmra.mxu1 %v1136_v29 }
 0x381   : > { %v1225_v2 = vpop.f32.mrf.mxu1 }
 0x382   : > { %v1226_v26 = vadd.f32 %v2927_v24, %v1225_v2 }
 0x384   : > { %v1258_v19 = vmax.f32 %v1226_v26, 0.0 }
 0x386   : > { %v1271_v60 = vpack.c.bf16 %v1258_v19, %v1257_v53 }
 0x388   : > { %1360 = vmatmul.bf16.gmra.mxu2 %v1271_v60 }
 0x3d3   : > { %v1228_v28 = vpop.f32.mrf.mxu1 }
 0x3d4   : > { %v1229_v38 = vadd.f32 %v2927_v24, %v1228_v28 }
 0x3d6   : > { %v1259_v34 = vmax.f32 %v1229_v38, 0.0 }
 0x3db   : > { %v1230_v32 = vpop.f32.mrf.mxu1 }
 0x3dc   : > { %v1231_v20 = vadd.f32 %v2927_v24, %v1230_v32 }
 0x3de   : > { %v1260_v50 = vmax.f32 %v1231_v20, 0.0 }
 0x3e0   : > { %v1272_v59 = vpack.c.bf16 %v1260_v50, %v1259_v34 }
 0x3e2   : > { %1365 = vmatmul.bf16.gmra.mxu2 %v1272_v59 }
 0x3e8   : > { %v1243_v27 = vpop.f32.mrf.mxu3 }
 0x3e9   : > { %v1244_v55 = vadd.f32 %v2927_v24, %v1243_v27 }
 0x3ea   : > { %v1233_v39 = vpop.f32.mrf.mxu1 }
 0x3eb   : > { %v1351_v9 = vpop.f32.mrf.mxu2  ;;  %v1234_v4 = vadd.f32 %v2927_v24, %v1233_v39  ;;  %v1265_v23 = vmax.f32 %v1244_v55, 0.0 }
 0x3ec   : > { %v1352_v21 = vadd.f32 %v2993_v22, %v1351_v9 }
 0x3ed   : > { %v1261_v11 = vmax.f32 %v1234_v4, 0.0 }
 0x3f0   : > { %v1245_v57 = vpop.f32.mrf.mxu3 }
 0x3f1   : > { %v1246_v54 = vadd.f32 %v2927_v24, %v1245_v57 }
 0x3f2   : > { %v1235_v10 = vpop.f32.mrf.mxu1 }
 0x3f3   : > { %v1353_v30 = vpop.f32.mrf.mxu2  ;;  %v1266_v49 = vmax.f32 %v1246_v54, 0.0  ;;  %v1236_v51 = vadd.f32 %v2927_v24, %v1235_v10 }
 0x3f4   : > { %v1354_v52 = vadd.f32 %v2993_v22, %v1353_v30 }
 0x3f5   : > { %v1275_v31 = vpack.c.bf16 %v1266_v49, %v1265_v23  ;;  %v1262_v41 = vmax.f32 %v1236_v51, 0.0 }
 0x3f6   : > { %v1729_v37 = vpack.c.bf16 %v1354_v52, %v1352_v21 }
 0x3f7   : > { %1380 = vmatmul.bf16.vlgmr.msra.gmra.mxu3 %v1275_v31  ;;  %v1273_v61 = vpack.c.bf16 %v1262_v41, %v1261_v11 }
 0x3f8   : > { %1730 = vst [vmem:[%s3002_s24] sm:$0xff] %v1729_v37   ;;  %v1248_v58 = vpop.f32.mrf.mxu3 }
 0x3f9   : > { %1370 = vmatmul.bf16.gmra.mxu2 %v1273_v61  ;;  %v1249_v62 = vadd.f32 %v2927_v24, %v1248_v58 }
 0x3fa   : > { %v1238_v5 = vpop.f32.mrf.mxu1 }
 0x3fb   : > { %v1356_v45 = vpop.f32.mrf.mxu2  ;;  %v1239_v17 = vadd.f32 %v2927_v24, %v1238_v5  ;;  %v1267_v63 = vmax.f32 %v1249_v62, 0.0 }
 0x3fc   : > { %v1357_v13 = vadd.f32 %v2993_v22, %v1356_v45 }
 0x3fd   : > { %v1263_v3 = vmax.f32 %v1239_v17, 0.0 }
 0x400   : > { %v1250_v46 = vpop.f32.mrf.mxu3 }
 0x401   : > { %v1251_v40 = vadd.f32 %v2927_v24, %v1250_v46 }
 0x402   : > { %v1240_v33 = vpop.f32.mrf.mxu1 }
 0x403   : > { %v1358_v16 = vpop.f32.mrf.mxu2  ;;  %v1268_v0 = vmax.f32 %v1251_v40, 0.0  ;;  %v1241_v1 = vadd.f32 %v2927_v24, %v1240_v33 }
 0x404   : > { %v1359_v36 = vadd.f32 %v2993_v22, %v1358_v16 }
 0x405   : > { %v1264_v43 = vmax.f32 %v1241_v1, 0.0  ;;  %v1276_v6 = vpack.c.bf16 %v1268_v0, %v1267_v63 }
 0x406   : > { %v1734_v7 = vpack.c.bf16 %v1359_v36, %v1357_v13 }
 0x407   : > { %1385 = vmatmul.bf16.gmra.mxu3 %v1276_v6  ;;  %v1274_v56 = vpack.c.bf16 %v1264_v43, %v1263_v3 }
 0x408   : > { %1773 = vst [vmem:[%s3002_s24 + $0x8] sm:$0xff] %v1734_v7  }
 0x409   : > { %1375 = vmatmul.bf16.gmra.mxu2 %v1274_v56 }
 0x40b   : > { %v1361_v12 = vpop.f32.mrf.mxu2 }
 0x40c   : > { %v1362_v35 = vadd.f32 %v2993_v22, %v1361_v12 }
 0x413   : > { %v1363_v8 = vpop.f32.mrf.mxu2 }
 0x414   : > { %v1364_v42 = vadd.f32 %v2993_v22, %v1363_v8 }
 0x416   : > { %v1739_v44 = vpack.c.bf16 %v1364_v42, %v1362_v35 }
 0x418   : > { %1774 = vst [vmem:[%s3002_s24 + $0x10] sm:$0xff] %v1739_v44  }
 0x465   : > { %v1366_v24 = vpop.f32.mrf.mxu2 }
 0x466   : > { %v1367_v47 = vadd.f32 %v2993_v22, %v1366_v24 }
 0x46d   : > { %v1368_v14 = vpop.f32.mrf.mxu2 }
 0x46e   : > { %v1369_v48 = vadd.f32 %v2993_v22, %v1368_v14 }
 0x470   : > { %v1744_v15 = vpack.c.bf16 %v1369_v48, %v1367_v47 }
 0x472   : > { %1775 = vst [vmem:[%s3002_s24 + $0x18] sm:$0xff] %v1744_v15  }
 0x47a   : > { %v1381_v18 = vpop.f32.mrf.mxu3 }
 0x47b   : > { %v1382_v2 = vadd.f32 %v2993_v22, %v1381_v18 }
 0x47c   : > { %v1371_v29 = vpop.f32.mrf.mxu2 }
 0x47d   : > { %v1372_v19 = vadd.f32 %v2993_v22, %v1371_v29 }
 0x482   : > { %v1383_v25 = vpop.f32.mrf.mxu3 }
 0x483   : > { %v1384_v26 = vadd.f32 %v2993_v22, %v1383_v25 }
 0x484   : > { %v1373_v53 = vpop.f32.mrf.mxu2 }
 0x485   : > { %v1759_v60 = vpack.c.bf16 %v1384_v26, %v1382_v2  ;;  %v1374_v28 = vadd.f32 %v2993_v22, %v1373_v53 }
 0x487   : > { %1778 = vst [vmem:[%s3002_s24 + $0x30] sm:$0xff] %v1759_v60   ;;  %v1749_v38 = vpack.c.bf16 %v1374_v28, %v1372_v19 }
 0x489   : > { %1776 = vst [vmem:[%s3002_s24 + $0x20] sm:$0xff] %v1749_v38  }
 0x48a   : > { %v1386_v32 = vpop.f32.mrf.mxu3 }
 0x48b   : > { %v1387_v50 = vadd.f32 %v2993_v22, %v1386_v32 }
 0x48c   : > { %v1376_v20 = vpop.f32.mrf.mxu2 }
 0x48d   : > { %v1377_v39 = vadd.f32 %v2993_v22, %v1376_v20 }
 0x492   : > { %v1388_v34 = vpop.f32.mrf.mxu3 }
 0x493   : > { %v1389_v59 = vadd.f32 %v2993_v22, %v1388_v34 }
 0x494   : > { %v1378_v27 = vpop.f32.mrf.mxu2 }
 0x495   : > { %v1764_v9 = vpack.c.bf16 %v1389_v59, %v1387_v50  ;;  %v1379_v55 = vadd.f32 %v2993_v22, %v1378_v27 }
 0x497   : > { %1779 = vst [vmem:[%s3002_s24 + $0x38] sm:$0xff] %v1764_v9   ;;  %v1754_v57 = vpack.c.bf16 %v1379_v55, %v1377_v39 }
 0x499   : > { %1777 = vst [vmem:[%s3002_s24 + $0x28] sm:$0xff] %v1754_v57  }
 0x49a   : > { %2142 = shalt.err (!%p2139_p10)
}
 0x49b   : > { %s2198_s28 = smov 64   ;;  %s2199_s17 = smov 4  }
 0x49c   : > { %1822 = dma.vmem_to_hbm [thread:$0]  (%p2323_p3), %s1437_s8, 1024, %s1439_s10, %s1424_s22, %s2198_s28, %s2198_s28, %s2199_s17  }
 0x49d PF: > { %s1453_s24 = sand.u32 1, %s2177_s18   ;;  %p3096_p12 = scmp.ge.s32.totalorder %s2189_s21, 2 }
 0x49e   : > { %s1454_s29 = scalar_lea.sflag [#allocation4], %s1453_s24 }
 0x49f   : > { %p1842_p13 = pnand %p3096_p12, %p2265_p6 }
 0x4a1   : > { %p1843_p0 = pneg %p1842_p13 }
 0x4a3   : > { %2172 = dma.done.wait (%p1843_p0), %s1454_s29, 1024  }
 0x4a4   : > { %2174 = vsyncadd (%p1843_p0), %s1454_s29, 4294966272  ;;  %p20_p5 = scmp.ge.s32.totalorder %s2313_s9, 4   ;;  %s3097_s18 = smov %s2181_s19 }
 0x4a5   : > { %s3098_s19 = smov %s2185_s20  ;;  %s3099_s20 = smov %s2329_s15 }
 0x4a6   : > { %s3100_s21 = smov %s2313_s9  ;;  %22 = sbr.rel (!%p20_p5) target bundleno = 7 (0x7), region = 101 }
 0x4ab   :  { %1460 = vsyncpa [#allocation3], 1 }
 0x4ac   :  { %1462 = vsyncpa [#allocation3 + $0x1], 1 }
 0x4ad   :  { %1463 = vsyncpa [#allocation6], 1 }
 0x4ae   :  { %1464 = vsyncpa [#allocation9], 1 }
 0x4af   :  { %1465 = vsyncpa [#allocation4], 1 }
 0x4b0   :  { %1467 = vsyncpa [#allocation4 + $0x1], 1 }

</bundles_post_ra>
